<compile_context>
chip_gen: v5e
topology: v5e:2x2
jax: 0.10.0
libtpu: 0.0.40
codegen_flags: <defaults>
</compile_context>

<pallas_src>
import functools

import jax
import jax.numpy as jnp
from jax import lax
from jax.experimental import pallas as pl
from jax.experimental.pallas import tpu as pltpu


def _cdiv(a, b):
    return (a + b - 1) // b


def _vq_kernel(x_ref, e_ref, neg2e_ref, e2_ref,
               q_ref, idx_ref, cnt_ref, sse_ref, *, n_total):
    """One N-tile of the VQ-VAE forward.

    x_ref:     (T, D)    flattened input rows for this tile (final tile ragged)
    e_ref:     (K, D)    f32 codebook (VMEM-resident, constant index_map)
    neg2e_ref: (K, D)    bf16 pre-scaled codebook  -2*e   (hoisted to wrapper)
    e2_ref:    (1, K)    f32 per-code ||e_j||^2           (hoisted to wrapper)
    q_ref:     (T, D)    quantized rows
    idx_ref:   (1, 1, T) int32 code index per row (lane-dense)
    cnt_ref:   (1, 1, K) per-tile code counts
    sse_ref:   (1, 1, 1) per-tile sum of squared error ||q - x||^2
    """
    t = x_ref.shape[0]
    k = e_ref.shape[0]

    x = x_ref[...].astype(jnp.float32)                          # (T, D)

    # argmin_j ||x - e_j||^2 == argmin_j (||e_j||^2 - 2 x.e_j): ||x||^2 is a
    # per-row constant, and the -2 is folded into the wrapper-precomputed bf16
    # codebook, so the per-tile work is one bf16 MXU matmul + one (T,K) add.
    xe = lax.dot_general(x.astype(jnp.bfloat16), neg2e_ref[...],
                         (((1,), (1,)), ((), ())),
                         preferred_element_type=jnp.float32)     # (T, K)
    score = xe + e2_ref[...]                                     # (T, K)

    # First-index argmin (torch.argmin tie-break semantics).
    col = lax.broadcasted_iota(jnp.int32, (t, k), 1)
    min_s = jnp.min(score, axis=1, keepdims=True)                # (T, 1)
    idx = jnp.min(jnp.where(score == min_s, col, k), axis=1)     # (T,)

    # Rows past the true N (ragged final tile reads stale VMEM) contribute
    # nothing; use `where` masks so even NaN garbage cannot leak into sums.
    row = pl.program_id(0) * t + lax.broadcasted_iota(jnp.int32, (t, 1), 0)
    valid = row < n_total                                        # (T, 1) bool

    # One-hot lives only in vregs (never written to HBM); bf16 is exact for
    # 0/1 and halves its spill footprint; counts reduced right away (f32 acc).
    enc = ((col == idx[:, None]) & valid).astype(jnp.bfloat16)   # (T, K)
    cnt_ref[...] = jnp.sum(enc, axis=0, dtype=jnp.float32).reshape(1, 1, k)

    # quantized = one_hot @ codebook: kept f32 so rows track the f32 codebook.
    q = jnp.dot(enc.astype(jnp.float32), e_ref[...],
                preferred_element_type=jnp.float32)              # (T, D)

    diff = jnp.where(valid, q - x, 0.0)
    sse_ref[...] = jnp.sum(diff * diff).reshape(1, 1, 1)
    idx_ref[...] = idx.reshape(1, 1, t)
    q_ref[...] = q.astype(q_ref.dtype)


def _vmem_bytes_needed(tile_n, d, k):
    """Rough per-kernel VMEM footprint."""
    tile_io = 2 * 2 * tile_n * d * 4                      # x + q, double-buffered
    codebook = 2 * (k * d * 4 + k * d * 2 + k * 4)        # e f32 + neg2e bf16 + e2
    # TODO(synk): pipeline_mode=pl.Buffered(1) on the constant-index codebook
    # specs would drop the factor-2 double buffer above; left at the default
    # for lowering safety.
    scores = tile_n * k * (4 + 4 + 2 + 4)                 # score, iota, bf16 one-hot, slack
    outs = 2 * (tile_n * 4 + (k + 1) * 4)
    return tile_io + codebook + scores + outs


def _vmem_cap_bytes():
    # Cap at ~3/4 of physical VMEM (=> ~48 MiB on v7x's 64 MiB/TC, ~96 MiB on
    # v5e/v6e's 128 MiB); fall back to the v7x-safe value if the query fails.
    try:
        return (3 * int(pltpu.get_tpu_info().vmem_capacity_bytes)) // 4
    except Exception:
        return 48 * 1024 * 1024


def _pick_tile_n(n, d, k, tile_n, vmem_cap):
    if tile_n is None:
        # Bigger tiles when the (T, K) intermediates are cheap (small K): the
        # ~0.35us per-grid-step overhead and v5e's lower HBM BW favour large
        # tiles for small D/K; shrink when K is large so (T, K) buffers fit.
        tile_n = 512 if k >= 2048 else (1024 if k >= 512 else 2048)
    n_tiles = _cdiv(n, 128)
    tile_tiles = max(1, min(tile_n // 128, n_tiles))
    if n_tiles >= 2:
        # Keep grid_n >= 2 so the "parallel" axis feeds both v7x TensorCores.
        tile_tiles = max(1, min(tile_tiles, n_tiles // 2))
    while tile_tiles > 1 and _vmem_bytes_needed(tile_tiles * 128, d, k) > vmem_cap:
        tile_tiles = max(1, tile_tiles // 2)
    return tile_tiles * 128


def vector_quantizer_forward(inputs, embedding, commitment_cost, *,
                             tile_n=None, return_encodings=True,
                             encodings_dtype=jnp.float32):
    """VQ-VAE VectorQuantizer forward for channel-last inputs (..., D).

    Returns (loss, quantized, perplexity, encodings) matching the PyTorch
    module's forward values; `encodings` is None when return_encodings=False.
    """
    input_shape = inputs.shape
    k, d = embedding.shape
    assert input_shape[-1] == d, "embedding_dim must be the last input axis"
    flat = inputs.reshape(-1, d)
    n = flat.shape[0]

    vmem_cap = _vmem_cap_bytes()
    tile_n = _pick_tile_n(n, d, k, tile_n, vmem_cap)
    grid_n = _cdiv(n, tile_n)       # ragged final tile; no jnp.pad copies
    vmem_limit = int(min(vmem_cap,
                         max(32 * 1024 * 1024,
                             2 * _vmem_bytes_needed(tile_n, d, k) + (4 << 20))))

    # Hoisted codebook prework: computed once, VMEM-resident across the grid.
    emb_f32 = embedding.astype(jnp.float32)
    e2 = jnp.sum(emb_f32 * emb_f32, axis=1)[None, :]             # (1, K) f32
    neg2e = (emb_f32 * -2.0).astype(jnp.bfloat16)                # (K, D) bf16

    kernel = functools.partial(_vq_kernel, n_total=n)

    cost = pl.CostEstimate(
        flops=int(4 * n * k * d + 10 * n * k),
        transcendentals=0,
        bytes_accessed=int(n * d * flat.dtype.itemsize           # x in
                           + k * d * 6 + k * 4                   # codebooks in
                           + n * d * flat.dtype.itemsize         # quantized out
                           + grid_n * tile_n * 4                 # indices out
                           + grid_n * (k + 1) * 4))              # partial sums

    q_flat, idx_tiles, cnt_tiles, sse_tiles = pl.pallas_call(
        kernel,
        grid=(grid_n,),
        in_specs=[
            pl.BlockSpec((tile_n, d), lambda i: (i, 0)),         # x tile
            pl.BlockSpec((k, d), lambda i: (0, 0)),              # codebook f32
            pl.BlockSpec((k, d), lambda i: (0, 0)),              # -2*codebook bf16
            pl.BlockSpec((1, k), lambda i: (0, 0)),              # ||e||^2
        ],
        out_specs=(
            pl.BlockSpec((tile_n, d), lambda i: (i, 0)),         # quantized tile
            pl.BlockSpec((1, 1, tile_n), lambda i: (i, 0, 0)),   # indices (lane-dense)
            pl.BlockSpec((1, 1, k), lambda i: (i, 0, 0)),        # per-tile counts
            pl.BlockSpec((1, 1, 1), lambda i: (i, 0, 0)),        # per-tile SSE
        ),
        out_shape=(
            jax.ShapeDtypeStruct((n, d), inputs.dtype),
            jax.ShapeDtypeStruct((grid_n, 1, tile_n), jnp.int32),
            jax.ShapeDtypeStruct((grid_n, 1, k), jnp.float32),
            jax.ShapeDtypeStruct((grid_n, 1, 1), jnp.float32),
        ),
        compiler_params=pltpu.CompilerParams(
            dimension_semantics=("parallel",),   # partial sums -> no accumulator
            vmem_limit_bytes=vmem_limit),
        cost_estimate=cost,
    )(flat, emb_f32, neg2e, e2)

    # Cheap global finalization in plain JAX (partial sums are only grid_n*K).
    counts = jnp.sum(cnt_tiles[:, 0, :], axis=0)                 # (K,)
    avg_probs = counts / jnp.float32(n)
    perplexity = jnp.exp(-jnp.sum(avg_probs * jnp.log(avg_probs + 1e-10)))

    mse = jnp.sum(sse_tiles) / jnp.float32(n * d)
    # Forward value: e_latent_loss == q_latent_loss numerically (detach only
    # affects gradients), so loss = (1 + commitment_cost) * mse.
    loss = (1.0 + commitment_cost) * mse

    # TODO(synk): forward-only; training use needs a custom_vjp implementing the
    # straight-through estimator and the q/e latent-loss gradient split.
    quantized = q_flat.reshape(input_shape)

    encodings = None
    if return_encodings:
        # Optional: the (N, K) one-hot is the largest HBM output; callers that
        # only need loss/quantized/perplexity should skip it.
        indices = idx_tiles.reshape(-1)[:n]
        encodings = jax.nn.one_hot(indices, k, dtype=encodings_dtype)

    return loss, quantized, perplexity, encodings


def _reference_forward(inputs, embedding, commitment_cost):
    """Plain-JAX f32 reference matching the PyTorch forward, plus tie gaps."""
    k, d = embedding.shape
    flat = inputs.reshape(-1, d).astype(jnp.float32)
    emb = embedding.astype(jnp.float32)
    dist = (jnp.sum(flat ** 2, axis=1, keepdims=True)
            + jnp.sum(emb ** 2, axis=1) - 2.0 * flat @ emb.T)
    idx = jnp.argmin(dist, axis=1)
    two_best = jnp.sort(dist, axis=1)[:, :2]
    gap = two_best[:, 1] - two_best[:, 0]
    enc = jax.nn.one_hot(idx, k, dtype=jnp.float32)
    q = enc @ emb
    mse = jnp.mean((q - flat) ** 2)
    loss = (1.0 + commitment_cost) * mse
    avg = jnp.mean(enc, axis=0)
    perp = jnp.exp(-jnp.sum(avg * jnp.log(avg + 1e-10)))
    return loss, q.reshape(inputs.shape), perp, enc, idx, gap


if __name__ == "__main__":
    # Small deterministic config; N = 2*12*12 = 288 -> 3 grid steps of 128 rows
    # with a ragged final tile (exercises the in-kernel row masking).
    num_embeddings = 16
    embedding_dim = 32
    commitment_cost = 0.25
    B, H, W = 2, 12, 12

    key = jax.random.PRNGKey(0)
    k_emb, k_in = jax.random.split(key)

    # nn.Embedding weight initialized uniform(-1/K, 1/K), deterministic here.
    embedding = jax.random.uniform(
        k_emb, (num_embeddings, embedding_dim), dtype=jnp.float32,
        minval=-1.0 / num_embeddings, maxval=1.0 / num_embeddings)

    # Channel-last layout (B, H, W, D) so .reshape(-1, D) matches torch's view.
    x = jax.random.normal(k_in, (B, H, W, embedding_dim), dtype=jnp.float32)

    loss, quantized, perplexity, encodings = jax.block_until_ready(
        vector_quantizer_forward(x, embedding, commitment_cost))

    # ---- verification ------------------------------------------------------
    r_loss, r_q, r_perp, r_enc, r_idx, r_gap = _reference_forward(
        x, embedding, commitment_cost)

    # Every row picked exactly one in-range code.
    row_sums = jnp.sum(encodings, axis=1)
    assert float(jnp.min(row_sums)) == 1.0 and float(jnp.max(row_sums)) == 1.0
    k_idx = jnp.argmax(encodings, axis=1)

    # bf16 distance scoring may legitimately flip near-tied codes; all clearly
    # separated rows must match the f32 reference argmin exactly.
    near_tie = r_gap < 2e-2
    assert bool(jnp.all((k_idx == r_idx) | near_tie))

    # Kernel outputs must be self-consistent with the codes it picked.
    flat = x.reshape(-1, embedding_dim)
    q_sel = embedding[k_idx]
    assert jnp.allclose(quantized.reshape(-1, embedding_dim), q_sel, atol=1e-3)
    mse_sel = jnp.mean((q_sel - flat) ** 2)
    assert jnp.allclose(loss, (1.0 + commitment_cost) * mse_sel, atol=1e-3)
    avg_sel = jnp.mean(jax.nn.one_hot(k_idx, num_embeddings, dtype=jnp.float32), axis=0)
    perp_sel = jnp.exp(-jnp.sum(avg_sel * jnp.log(avg_sel + 1e-10)))
    assert jnp.allclose(perplexity, perp_sel, atol=1e-3)

    # And agree with the f32 reference up to near-tie flips / MXU rounding.
    assert jnp.allclose(loss, r_loss, atol=2e-3)
    assert jnp.allclose(perplexity, r_perp, rtol=0.1)
    assert bool(jnp.all(jnp.where(near_tie[:, None], True, encodings == r_enc)))

    print("KERNEL_OK")
</pallas_src>

<mosaic_0001>
module attributes {stable_mosaic.version = 11 : i64} {
  func.func @_vq_kernel(%arg0: i32, %arg1: memref<128x32xf32, #tpu.memory_space<vmem>>, %arg2: memref<16x32xf32, #tpu.memory_space<vmem>>, %arg3: memref<16x32xbf16, #tpu.memory_space<vmem>>, %arg4: memref<1x16xf32, #tpu.memory_space<vmem>>, %arg5: memref<128x32xf32, #tpu.memory_space<vmem>>, %arg6: memref<1x1x128xi32, #tpu.memory_space<vmem>>, %arg7: memref<1x1x16xf32, #tpu.memory_space<vmem>>, %arg8: memref<1x1x1xf32, #tpu.memory_space<vmem>>) attributes {dimension_semantics = [#tpu.dimension_semantics<parallel>], iteration_bounds = array<i64: 3>, scalar_prefetch = 0 : i64, scratch_operands = 0 : i64, tpu.core_type = #tpu.core_type<tc>, window_params = [{transform_indices = @transform_0, window_bounds = array<i64: 128, 32>}, {pipeline_mode = #tpu.pipeline_mode<synchronous>, transform_indices = @transform_1, window_bounds = array<i64: 16, 32>}, {pipeline_mode = #tpu.pipeline_mode<synchronous>, transform_indices = @transform_2, window_bounds = array<i64: 16, 32>}, {pipeline_mode = #tpu.pipeline_mode<synchronous>, transform_indices = @transform_3, window_bounds = array<i64: 1, 16>}, {transform_indices = @transform_4, window_bounds = array<i64: 128, 32>}, {transform_indices = @transform_5, window_bounds = array<i64: 1, 1, 128>}, {transform_indices = @transform_6, window_bounds = array<i64: 1, 1, 16>}, {transform_indices = @transform_7, window_bounds = array<i64: 1, 1, 1>}]} {
    %c0 = arith.constant 0 : index
    %c0_0 = arith.constant 0 : index
    %0 = vector.load %arg1[%c0, %c0_0] : memref<128x32xf32, #tpu.memory_space<vmem>>, vector<128x32xf32>
    %1 = arith.truncf %0 : vector<128x32xf32> to vector<128x32xbf16>
    %c0_1 = arith.constant 0 : index
    %c0_2 = arith.constant 0 : index
    %2 = vector.load %arg3[%c0_1, %c0_2] : memref<16x32xbf16, #tpu.memory_space<vmem>>, vector<16x32xbf16>
    %cst = arith.constant dense<0.000000e+00> : vector<128x16xf32>
    %3 = tpu.matmul %1, %2, %cst {dimension_numbers = #tpu.dot_dimension_numbers<[1], [1], [0], [0], [0, 0, 1, 0], [], []>} : vector<128x32xbf16>, vector<16x32xbf16>, vector<128x16xf32> -> vector<128x16xf32>
    %c0_3 = arith.constant 0 : index
    %c0_4 = arith.constant 0 : index
    %4 = vector.load %arg4[%c0_3, %c0_4] : memref<1x16xf32, #tpu.memory_space<vmem>>, vector<1x16xf32>
    %5 = vector.broadcast %4 : vector<1x16xf32> to vector<128x16xf32>
    %6 = arith.addf %3, %5 : vector<128x16xf32>
    %7 = tpu.iota {dimensions = array<i32: 1>} : vector<128x16xi32>
    %cst_5 = arith.constant dense<0x7F800000> : vector<128xf32>
    %8 = vector.multi_reduction <minimumf>, %6, %cst_5 [1] : vector<128x16xf32> to vector<128xf32>
    %9 = vector.shape_cast %8 : vector<128xf32> to vector<128x1xf32>
    %10 = vector.broadcast %9 : vector<128x1xf32> to vector<128x16xf32>
    %11 = arith.cmpf oeq, %6, %10 : vector<128x16xf32>
    %c16_i32 = arith.constant 16 : i32
    %12 = vector.broadcast %c16_i32 : i32 to vector<128x16xi32>
    %13 = arith.select %11, %7, %12 : vector<128x16xi1>, vector<128x16xi32>
    %cst_6 = arith.constant dense<2147483647> : vector<128xi32>
    %14 = vector.multi_reduction <minsi>, %13, %cst_6 [1] : vector<128x16xi32> to vector<128xi32>
    %c128_i32 = arith.constant 128 : i32
    %15 = arith.muli %arg0, %c128_i32 : i32
    %16 = tpu.iota {dimensions = array<i32: 0>} : vector<128x1xi32>
    %17 = vector.broadcast %15 : i32 to vector<128x1xi32>
    %18 = arith.addi %17, %16 : vector<128x1xi32>
    %c288_i32 = arith.constant 288 : i32
    %19 = vector.broadcast %c288_i32 : i32 to vector<128x1xi32>
    %20 = arith.cmpi slt, %18, %19 : vector<128x1xi32>
    %21 = vector.shape_cast %14 : vector<128xi32> to vector<128x1xi32>
    %22 = vector.broadcast %21 : vector<128x1xi32> to vector<128x16xi32>
    %23 = arith.cmpi eq, %7, %22 : vector<128x16xi32>
    %24 = vector.broadcast %20 : vector<128x1xi1> to vector<128x16xi1>
    %25 = arith.andi %23, %24 : vector<128x16xi1>
    %26 = arith.extui %25 : vector<128x16xi1> to vector<128x16xi32>
    %27 = arith.sitofp %26 : vector<128x16xi32> to vector<128x16xf32>
    %28 = arith.truncf %27 : vector<128x16xf32> to vector<128x16xbf16>
    %29 = arith.extf %28 : vector<128x16xbf16> to vector<128x16xf32>
    %cst_7 = arith.constant dense<0.000000e+00> : vector<16xf32>
    %30 = vector.multi_reduction <add>, %29, %cst_7 [0] : vector<128x16xf32> to vector<16xf32>
    %31 = vector.shape_cast %30 : vector<16xf32> to vector<1x1x16xf32>
    %c0_8 = arith.constant 0 : index
    %c0_9 = arith.constant 0 : index
    %c0_10 = arith.constant 0 : index
    %32 = vector.load %arg7[%c0_8, %c0_9, %c0_10] : memref<1x1x16xf32, #tpu.memory_space<vmem>>, vector<1x1x16xf32>
    tpu.vector_store %arg7[%c0_8, %c0_9, %c0_10], %31 {strides = array<i32>} : memref<1x1x16xf32, #tpu.memory_space<vmem>>, vector<1x1x16xf32>,
    %33 = arith.extf %28 : vector<128x16xbf16> to vector<128x16xf32>
    %c0_11 = arith.constant 0 : index
    %c0_12 = arith.constant 0 : index
    %34 = vector.load %arg2[%c0_11, %c0_12] : memref<16x32xf32, #tpu.memory_space<vmem>>, vector<16x32xf32>
    %cst_13 = arith.constant dense<0.000000e+00> : vector<128x32xf32>
    %35 = tpu.matmul %33, %34, %cst_13 {dimension_numbers = #tpu.dot_dimension_numbers<[1], [0], [0], [1], [0, 0, 1, 1], [], []>} : vector<128x16xf32>, vector<16x32xf32>, vector<128x32xf32> -> vector<128x32xf32>
    %36 = arith.subf %35, %0 : vector<128x32xf32>
    %cst_14 = arith.constant 0.000000e+00 : f32
    %37 = vector.shape_cast %20 : vector<128x1xi1> to vector<128x1xi1>
    %38 = vector.broadcast %37 : vector<128x1xi1> to vector<128x32xi1>
    %39 = vector.broadcast %cst_14 : f32 to vector<128x32xf32>
    %40 = arith.select %38, %36, %39 : vector<128x32xi1>, vector<128x32xf32>
    %41 = arith.mulf %40, %40 : vector<128x32xf32>
    %42 = vector.shape_cast %41 : vector<128x32xf32> to vector<1x128x32xf32>
    %cst_15 = arith.constant dense<0.000000e+00> : vector<1xf32>
    %43 = vector.multi_reduction <add>, %42, %cst_15 [1, 2] : vector<1x128x32xf32> to vector<1xf32>
    %44 = vector.shape_cast %43 : vector<1xf32> to vector<1x1x1xf32>
    %45 = vector.extract %44[0, 0, 0] : f32 from vector<1x1x1xf32>
    %46 = vector.broadcast %45 : f32 to vector<1x1x1xf32>
    %c0_16 = arith.constant 0 : index
    %c0_17 = arith.constant 0 : index
    %c0_18 = arith.constant 0 : index
    %47 = vector.load %arg8[%c0_16, %c0_17, %c0_18] : memref<1x1x1xf32, #tpu.memory_space<vmem>>, vector<1x1x1xf32>
    tpu.vector_store %arg8[%c0_16, %c0_17, %c0_18], %46 {strides = array<i32>} : memref<1x1x1xf32, #tpu.memory_space<vmem>>, vector<1x1x1xf32>,
    %48 = vector.shape_cast %14 : vector<128xi32> to vector<1x1x128xi32>
    %c0_19 = arith.constant 0 : index
    %c0_20 = arith.constant 0 : index
    %c0_21 = arith.constant 0 : index
    %49 = vector.load %arg6[%c0_19, %c0_20, %c0_21] : memref<1x1x128xi32, #tpu.memory_space<vmem>>, vector<1x1x128xi32>
    tpu.vector_store %arg6[%c0_19, %c0_20, %c0_21], %48 {strides = array<i32>} : memref<1x1x128xi32, #tpu.memory_space<vmem>>, vector<1x1x128xi32>,
    %c0_22 = arith.constant 0 : index
    %c0_23 = arith.constant 0 : index
    %50 = vector.load %arg5[%c0_22, %c0_23] : memref<128x32xf32, #tpu.memory_space<vmem>>, vector<128x32xf32>
    tpu.vector_store %arg5[%c0_22, %c0_23], %35 {strides = array<i32>} : memref<128x32xf32, #tpu.memory_space<vmem>>, vector<128x32xf32>,
    return
  }
  func.func @transform_0(%arg0: i32) -> (i32, i32) {
    %c0_i32 = arith.constant 0 : i32
    %c0_i32_0 = arith.constant 0 : i32
    return %arg0, %c0_i32 : i32, i32
  }
  func.func @transform_1(%arg0: i32) -> (i32, i32) {
    %c0_i32 = arith.constant 0 : i32
    %c0_i32_0 = arith.constant 0 : i32
    %c0_i32_1 = arith.constant 0 : i32
    return %c0_i32, %c0_i32_0 : i32, i32
  }
  func.func @transform_2(%arg0: i32) -> (i32, i32) {
    %c0_i32 = arith.constant 0 : i32
    %c0_i32_0 = arith.constant 0 : i32
    %c0_i32_1 = arith.constant 0 : i32
    return %c0_i32, %c0_i32_0 : i32, i32
  }
  func.func @transform_3(%arg0: i32) -> (i32, i32) {
    %c0_i32 = arith.constant 0 : i32
    %c0_i32_0 = arith.constant 0 : i32
    %c0_i32_1 = arith.constant 0 : i32
    return %c0_i32, %c0_i32_0 : i32, i32
  }
  func.func @transform_4(%arg0: i32) -> (i32, i32) {
    %c0_i32 = arith.constant 0 : i32
    %c0_i32_0 = arith.constant 0 : i32
    return %arg0, %c0_i32 : i32, i32
  }
  func.func @transform_5(%arg0: i32) -> (i32, i32, i32) {
    %c0_i32 = arith.constant 0 : i32
    %c0_i32_0 = arith.constant 0 : i32
    %c0_i32_1 = arith.constant 0 : i32
    return %arg0, %c0_i32, %c0_i32_0 : i32, i32, i32
  }
  func.func @transform_6(%arg0: i32) -> (i32, i32, i32) {
    %c0_i32 = arith.constant 0 : i32
    %c0_i32_0 = arith.constant 0 : i32
    %c0_i32_1 = arith.constant 0 : i32
    return %arg0, %c0_i32, %c0_i32_0 : i32, i32, i32
  }
  func.func @transform_7(%arg0: i32) -> (i32, i32, i32) {
    %c0_i32 = arith.constant 0 : i32
    %c0_i32_0 = arith.constant 0 : i32
    %c0_i32_1 = arith.constant 0 : i32
    return %arg0, %c0_i32, %c0_i32_0 : i32, i32, i32
  }
}

</mosaic_0001>

<bundles_post_ra>
// kernel: tpu_custom_call.1
= control target key start
LH: loop header
LB: loop body
LE: loop exit
PB: predicated region body
PF: predicated region fallthrough
CT: control target
= control target key end

     0   :  { %s2992_s0 = inlined_call_operand.vmem [shape: f32[288,32], index: 0, kind: input, shape index: {}]   ;;  %s2993_s1 = inlined_call_operand.vmem [shape: f32[16,32], index: 1, kind: input, shape index: {}]   ;;  %s2994_s2 = inlined_call_operand.vmem [shape: bf16[16,32], index: 2, kind: input, shape index: {}]   ;;  %s2995_s3 = inlined_call_operand.vmem [shape: f32[1,16], index: 3, kind: input, shape index: {}]   ;;  %s2996_s4 = inlined_call_operand.vmem [shape: f32[288,32], index: 4, kind: output, shape index: {0}]   ;;  %s2997_s5 = inlined_call_operand.hbm [shape: s32[3,1,128], index: 5, kind: output, shape index: {1}]   ;;  %s2998_s6 = inlined_call_operand.hbm [shape: f32[3,1,16], index: 6, kind: output, shape index: {2}]   ;;  %s2999_s7 = inlined_call_operand.vmem [shape: f32[3,1,1], index: 7, kind: output, shape index: {3}]  }
   0x1   :  { %3013 = sst [smem:[#allocation9_spill]] %s2992_s0 }
   0x2   :  { %3014 = sst [smem:[#allocation10_spill]] %s2993_s1 }
   0x3   :  { %3015 = sst [smem:[#allocation11_spill]] %s2994_s2 }
   0x4   :  { %13 = vsyncpa [#allocation4], 0 }
   0x5   :  { %15 = vsyncpa [#allocation4 + $0x1], 0 }
   0x6   :  { %16 = vsyncpa [#allocation6], 0 }
   0x7   :  { %18 = vsyncpa [#allocation6 + $0x1], 0  ;;  %s2053_s24 = smov 0   ;;  %s2055_s25 = smov 0  }
   0x8   :  { %s2057_s26 = smov 0   ;;  %s2059_s27 = smov 0  }
   0x9 LB: > { %s2074_s28 = sadd.s32 4294967295, %s1978_s27   ;;  %s1648_s29 = sadd.s32 4294967294, %s1978_s27   ;;  %s1978_s27 = sphi %s2059_s27, %s3044_s27   ;;  %s1974_s26 = sphi %s2057_s26, %s3043_s26   ;;  %s1970_s25 = sphi %s2055_s25, %s3042_s25   ;;  %s1966_s24 = sphi %s2053_s24, %s3041_s24  }
   0xa   : > { %s2078_s30 = sadd.s32 1, %s1978_s27   ;;  %s120_s8 = sadd.s32 1, %s1974_s26 }
   0xb   : > { %s117_s9 = ssub.s32 %s1978_s27, %s2078_s30  ;;  %p130_p0 = scmp.ne.s32.totalorder %s1974_s26, %s1970_s25 }
   0xc   : > { %p118_p1 = scmp.eq.s32.totalorder %s117_s9, 0  ;;  %p131_p2 = scmp.eq.s32.totalorder %s2074_s28, 2 }
   0xd   : > { %p162_p3 = scmp.ne.s32.totalorder %s1970_s25, %s1966_s24  ;;  %p163_p4 = scmp.eq.s32.totalorder %s1648_s29, 2 }
   0xe   : > { %s2089_s10 = scalar_select %p118_p1, %s1974_s26, %s120_s8  }
   0xf   : > { %p2091_p5 = por %p131_p2, %p130_p0  ;;  %p2095_p6 = por %p163_p4, %p162_p3 }
  0x10   : > { %p1651_p7 = scmp.ge.s32.totalorder %s1978_s27, 1  ;;  %p259_p8 = scmp.lt.s32.totalorder %s1978_s27, 4 }
  0x12   : > { %p260_p9 = pnand %p1651_p7, %p259_p8 }
  0x13   : > { %s3018_s2 = sld [smem:[#allocation11_spill]] (!%p260_p9)  ;;  %s2105_s15 = sshll.u32 (!%p260_p9), %s2074_s28, 4 }
  0x14   : > { %263 = sbr.rel (%p260_p9) target bundleno = 997 (0x3e5), region = 36  ;;  %p310_p10 = scmp.lt.s32.totalorder (!%p260_p9), %s2105_s15, 35 }
  0x15   : > { %s3019_s0 = sld [smem:[#allocation9_spill]] (!%p260_p9)  ;;  %s2448_s23 = sand.u32 (!%p260_p9), 1, %s1970_s25  }
  0x16   : > { %s3020_s1 = sld [smem:[#allocation10_spill]] (!%p260_p9)  ;;  %s1667_s14 = sshll.u32 (!%p260_p9), %s2074_s28, 7 }
  0x17   : > { %s1652_s18 = sshll.u32 (!%p260_p9), %s2448_s23, 7  ;;  %p324_p11 = scmp.lt.s32.totalorder (!%p260_p9), %s2074_s28, 2 }
  0x18   : > { %s2727_s19 = scalar_lea.vmem (!%p260_p9), [#allocation2], %s1652_s18  }
  0x19   : > { %v1717_v0 = vld [vmem:[%s3018_s2] sm:$0xff]  ;;  %vm363_vm0 = vcmask 261120   ;;  %s311_s16 = scalar_select %p310_p10, %s2105_s15, 35  ;;  %vm442_vm1 = vcmask 130048  }
  0x1a   : > { %v389_v1 = vsel %vm363_vm0, %v1717_v0, 0  ;;  %v2142_v26 = vld [vmem:[%s2995_s3] ss:$0 sm:$0xff]  ;;  %s1276_s18 = ssub.s32 (%p2091_p5), 36, %s2105_s15 }
  0x1b   : > { %398 = vmatpush.bf16.xpose.msra.mxu0 %v389_v1  ;;  %1721 = vmatpush.bf16.xpose.msra.mxu2 %v389_v1  ;;  %s1654_s17 = sshll.u32 %s311_s16, 3  ;;  %s3012_s16 = scalar_lea.vmem [#allocation3], %s2448_s23 }
  0x1c   : > { %s2113_s20 = scalar_lea.vmem %s3019_s0, %s1654_s17  ;;  %s3011_s17 = scalar_lea.vmem [#allocation5], %s2448_s23 }
  0x1d   : > { %v328_v2 = vld [vmem:[%s2113_s20] sm:$0xff]  ;;  %v329_v3 = vld [vmem:[%s2113_s20 + $0x8] sm:$0xff]  ;;  %v330_v8 = vld [vmem:[%s2113_s20 + $0x10] sm:$0xff]  ;;  %s2852_s0 = scalar_lea.vmem (%p2091_p5), %s2996_s4, %s1667_s14   ;;  %p1277_p12 = scmp.lt.s32.totalorder (%p2091_p5), %s1276_s18, 16 }
  0x1e   : > { %v336_v4 = vld [vmem:[%s2113_s20 + $0x40] sm:$0xff]  ;;  %v344_v5 = vpack.c.bf16 %v329_v3, %v328_v2  ;;  %v337_v6 = vld [vmem:[%s2113_s20 + $0x48] sm:$0xff]  ;;  %v331_v9 = vld [vmem:[%s2113_s20 + $0x18] sm:$0xff] }
  0x1f   : > { %v348_v7 = vpack.c.bf16 %v337_v6, %v336_v4  ;;  %v338_v10 = vld [vmem:[%s2113_s20 + $0x50] sm:$0xff]  ;;  %v339_v11 = vld [vmem:[%s2113_s20 + $0x58] sm:$0xff]  ;;  %v345_v12 = vpack.c.bf16 %v331_v9, %v330_v8  ;;  %v332_v14 = vld [vmem:[%s2113_s20 + $0x20] sm:$0xff] }
  0x20   : > { %v349_v13 = vpack.c.bf16 %v339_v11, %v338_v10  ;;  %v333_v15 = vld [vmem:[%s2113_s20 + $0x28] sm:$0xff]  ;;  %v340_v16 = vld [vmem:[%s2113_s20 + $0x60] sm:$0xff]  ;;  %v334_v20 = vld [vmem:[%s2113_s20 + $0x30] sm:$0xff]  ;;  %v440_v11 = vlaneseq }
  0x21   : > { %v341_v17 = vld [vmem:[%s2113_s20 + $0x68] sm:$0xff]  ;;  %v346_v18 = vpack.c.bf16 %v333_v15, %v332_v14  ;;  %v335_v21 = vld [vmem:[%s2113_s20 + $0x38] sm:$0xff]  ;;  %v342_v22 = vld [vmem:[%s2113_s20 + $0x70] sm:$0xff] }
  0x22   : > { %1659 = vmatmul.msk.bf16.vlgmr.msra.gmra.mxu0 %vm363_vm0, %v344_v5  ;;  %1663 = vmatmul.msk.bf16.vlgmr.msra.gmra.mxu2 %vm363_vm0, %v348_v7  ;;  %v350_v19 = vpack.c.bf16 %v341_v17, %v340_v16  ;;  %v343_v23 = vld [vmem:[%s2113_s20 + $0x78] sm:$0xff]  ;;  %v347_v24 = vpack.c.bf16 %v335_v21, %v334_v20 }
  0x23   : > { %v351_v25 = vpack.c.bf16 %v343_v23, %v342_v22 }
  0x32   : > { %1660 = vmatmul.msk.bf16.gmra.mxu0 %vm363_vm0, %v345_v12  ;;  %1664 = vmatmul.msk.bf16.gmra.mxu2 %vm363_vm0, %v349_v13  ;;  %v2225_v12 = vand.u32 127, %v440_v11 }
  0x42   : > { %1661 = vmatmul.msk.bf16.gmra.mxu0 %vm363_vm0, %v346_v18  ;;  %1665 = vmatmul.msk.bf16.gmra.mxu2 %vm363_vm0, %v350_v19 }
  0x52   : > { %1662 = vmatmul.msk.bf16.gmra.mxu0 %vm363_vm0, %v347_v24  ;;  %1666 = vmatmul.msk.bf16.gmra.mxu2 %vm363_vm0, %v351_v25 }
  0x9f   : > { %v400_v27 = vpop.f32.mrf.mxu0 }
  0xa0   : > { %v2145_v28 = vadd.f32 %v2142_v26, %v400_v27 }
  0xa2   : > { %v443_v29 = vsel %vm442_vm1, %v2145_v28, inf }
  0xa3   : > { %444 = vmin.xlane.f32.xlu0 %v443_v29 }
  0xa5   : > { %v420_v30 = vpop.f32.mrf.mxu2 }
  0xa6   : > { %v2213_v5 = vadd.f32 %v2142_v26, %v420_v30 }
  0xa7   : > { %v402_v31 = vpop.f32.mrf.mxu0 }
  0xa8   : > { %v2150_v32 = vadd.f32 %v2142_v26, %v402_v31  ;;  %v467_v7 = vsel %vm442_vm1, %v2213_v5, inf }
  0xaa   : > { %v446_v33 = vsel %vm442_vm1, %v2150_v32, inf }
  0xab   : > { %447 = vmin.xlane.f32.xlu0 %v446_v33 }
  0xad   : > { %v422_v34 = vpop.f32.mrf.mxu2 }
  0xae   : > { %v2155_v35 = vadd.f32 %v2142_v26, %v422_v34 }
  0xaf   : > { %v405_v36 = vpop.f32.mrf.mxu0 }
  0xb0   : > { %v2158_v37 = vadd.f32 %v2142_v26, %v405_v36  ;;  %v470_v38 = vsel %vm442_vm1, %v2155_v35, inf }
  0xb1   : > { %471 = vmin.xlane.f32.xlu2 %v470_v38 }
  0xb2   : > { %v449_v39 = vsel %vm442_vm1, %v2158_v37, inf }
  0xb3   : > { %450 = vmin.xlane.f32.xlu1 %v449_v39 }
  0xb5   : > { %v425_v40 = vpop.f32.mrf.mxu2 }
  0xb6   : > { %v2165_v41 = vadd.f32 %v2142_v26, %v425_v40 }
  0xb7   : > { %v407_v42 = vpop.f32.mrf.mxu0 }
  0xb8   : > { %v2168_v43 = vadd.f32 %v2142_v26, %v407_v42  ;;  %v473_v44 = vsel %vm442_vm1, %v2165_v41, inf }
  0xb9   : > { %474 = vmin.xlane.f32.xlu0 %v473_v44 }
  0xba   : > { %v452_v45 = vsel %vm442_vm1, %v2168_v43, inf }
  0xbb   : > { %453 = vmin.xlane.f32.xlu1 %v452_v45 }
  0xbd   : > { %v427_v46 = vpop.f32.mrf.mxu2 }
  0xbe   : > { %v2180_v50 = vadd.f32 %v2142_v26, %v427_v46 }
  0xbf   : > { %v410_v47 = vpop.f32.mrf.mxu0 }
  0xc0   : > { %v2175_v48 = vadd.f32 %v2142_v26, %v410_v47  ;;  %v476_v54 = vsel %vm442_vm1, %v2180_v50, inf }
  0xc2   : > { %v455_v49 = vsel %vm442_vm1, %v2175_v48, inf }
  0xc3   : > { %456 = vmin.xlane.f32.xlu2 %v455_v49 }
  0xc5   : > { %v430_v51 = vpop.f32.mrf.mxu2 }
  0xc6   : > { %v2190_v56 = vadd.f32 %v2142_v26, %v430_v51 }
  0xc7   : > { %v412_v52 = vpop.f32.mrf.mxu0 }
  0xc8   : > { %v2183_v53 = vadd.f32 %v2142_v26, %v412_v52  ;;  %v479_v60 = vsel %vm442_vm1, %v2190_v56, inf }
  0xca   : > { %v458_v55 = vsel %vm442_vm1, %v2183_v53, inf }
  0xcb   : > { %477 = vmin.xlane.f32.xlu2 %v476_v54  ;;  %459 = vmin.xlane.f32.xlu1 %v458_v55 }
  0xcd   : > { %v432_v58 = vpop.f32.mrf.mxu2 }
  0xce   : > { %v2200_v62 = vadd.f32 %v2142_v26, %v432_v58 }
  0xcf   : > { %v415_v57 = vpop.f32.mrf.mxu0 }
  0xd0   : > { %v2193_v59 = vadd.f32 %v2142_v26, %v415_v57  ;;  %v482_v2 = vsel %vm442_vm1, %v2200_v62, inf }
  0xd2   : > { %v461_v61 = vsel %vm442_vm1, %v2193_v59, inf }
  0xd3   : > { %480 = vmin.xlane.f32.xlu2 %v479_v60  ;;  %462 = vmin.xlane.f32.xlu1 %v461_v61 }
  0xd5   : > { %v435_v1 = vpop.f32.mrf.mxu2 }
  0xd6   : > { %v2210_v4 = vadd.f32 %v2142_v26, %v435_v1 }
  0xd7   : > { %v417_v63 = vpop.f32.mrf.mxu0 }
  0xd8   : > { %v2203_v0 = vadd.f32 %v2142_v26, %v417_v63  ;;  %v485_v6 = vsel %vm442_vm1, %v2210_v4, inf }
  0xda   : > { %v464_v3 = vsel %vm442_vm1, %v2203_v0, inf }
  0xdb   : > { %483 = vmin.xlane.f32.xlu2 %v482_v2  ;;  %465 = vmin.xlane.f32.xlu1 %v464_v3 }
  0xdd   : > { %v437_v8 = vpop.f32.mrf.mxu2 }
  0xde   : > { %v2220_v9 = vadd.f32 %v2142_v26, %v437_v8 }
  0xe0   : > { %v488_v10 = vsel %vm442_vm1, %v2220_v9, inf }
  0xe3   : > { %486 = vmin.xlane.f32.xlu2 %v485_v6  ;;  %468 = vmin.xlane.f32.xlu1 %v467_v7 }
  0xeb   : > { %489 = vmin.xlane.f32.xlu2 %v488_v10 }
 0x116   : > { %v445_v13 = vpop.xlane.xlu0 %444 }
 0x117   : > { %vm491_vm2 = vcmp.eq.f32.partialorder %v2145_v28, %v445_v13 }
 0x118   : > { %v507_v14 = vsel %vm491_vm2, %v2225_v12, 16 }
 0x119   : > { %v2230_v15 = vsel %vm442_vm1, %v507_v14, 2147483647 }
 0x11a   : > { %v525_v16 = vshra.s32 %v2230_v15, 16 }
 0x11c   : > { %v2233_v17 = vcvt.s32.f32 %v525_v16 }
 0x11e   : > { %528 = vmin.xlane.f32.xlu0 %v2233_v17  ;;  %v448_v18 = vpop.xlane.xlu0 %447 }
 0x11f   : > { %vm492_vm3 = vcmp.eq.f32.partialorder %v2150_v32, %v448_v18 }
 0x120   : > { %v508_v19 = vsel %vm492_vm3, %v2225_v12, 16 }
 0x121   : > { %v2239_v20 = vsel %vm442_vm1, %v508_v19, 2147483647 }
 0x122   : > { %v540_v21 = vshra.s32 %v2239_v20, 16 }
 0x124   : > { %v2242_v22 = vcvt.s32.f32 %v540_v21  ;;  %v472_v23 = vpop.xlane.xlu2 %471 }
 0x125   : > { %vm500_vm4 = vcmp.eq.f32.partialorder %v2155_v35, %v472_v23 }
 0x126   : > { %v451_v24 = vpop.xlane.xlu1 %450  ;;  %543 = vmin.xlane.f32.xlu0 %v2242_v22  ;;  %v516_v25 = vsel %vm500_vm4, %v2225_v12, 16 }
 0x127   : > { %vm493_vm5 = vcmp.eq.f32.partialorder %v2158_v37, %v451_v24  ;;  %v2249_v26 = vsel %vm442_vm1, %v516_v25, 2147483647 }
 0x128   : > { %v509_v27 = vsel %vm493_vm5, %v2225_v12, 16  ;;  %v660_v29 = vshra.s32 %v2249_v26, 16 }
 0x129   : > { %v2253_v28 = vsel %vm442_vm1, %v509_v27, 2147483647 }
 0x12a   : > { %v555_v30 = vshra.s32 %v2253_v28, 16  ;;  %v2257_v31 = vcvt.s32.f32 %v660_v29 }
 0x12c   : > { %v2259_v32 = vcvt.s32.f32 %v555_v30  ;;  %663 = vmin.xlane.f32.xlu1 %v2257_v31  ;;  %v475_v33 = vpop.xlane.xlu0 %474 }
 0x12d   : > { %vm501_vm6 = vcmp.eq.f32.partialorder %v2165_v41, %v475_v33 }
 0x12e   : > { %v454_v34 = vpop.xlane.xlu1 %453  ;;  %558 = vmin.xlane.f32.xlu0 %v2259_v32  ;;  %v517_v35 = vsel %vm501_vm6, %v2225_v12, 16 }
 0x12f   : > { %vm494_vm7 = vcmp.eq.f32.partialorder %v2168_v43, %v454_v34  ;;  %v2267_v36 = vsel %vm442_vm1, %v517_v35, 2147483647 }
 0x130   : > { %v510_v37 = vsel %vm494_vm7, %v2225_v12, 16  ;;  %v675_v39 = vshra.s32 %v2267_v36, 16 }
 0x131   : > { %v2271_v38 = vsel %vm442_vm1, %v510_v37, 2147483647 }
 0x132   : > { %v570_v40 = vshra.s32 %v2271_v38, 16  ;;  %v2275_v41 = vcvt.s32.f32 %v675_v39 }
 0x134   : > { %v2277_v42 = vcvt.s32.f32 %v570_v40  ;;  %678 = vmin.xlane.f32.xlu1 %v2275_v41 }
 0x136   : > { %v457_v44 = vpop.xlane.xlu2 %456  ;;  %573 = vmin.xlane.f32.xlu0 %v2277_v42 }
 0x137   : > { %vm495_vm8 = vcmp.eq.f32.partialorder %v2175_v48, %v457_v44 }
 0x138   : > { %v511_v43 = vsel %vm495_vm8, %v2225_v12, 16 }
 0x139   : > { %v2284_v45 = vsel %vm442_vm1, %v511_v43, 2147483647  ;;  %v524_v43 = vand.u32 65535, %v2230_v15  ;;  %v659_v15 = vand.u32 65535, %v2249_v26  ;;  %v674_v26 = vand.u32 65535, %v2267_v36 }
 0x13a   : > { %v585_v46 = vshra.s32 %v2284_v45, 16  ;;  %v584_v36 = vand.u32 65535, %v2284_v45 }
 0x13c   : > { %v2287_v47 = vcvt.s32.f32 %v585_v46 }
 0x13e   : > { %v478_v49 = vpop.xlane.xlu2 %477  ;;  %v460_v51 = vpop.xlane.xlu1 %459  ;;  %588 = vmin.xlane.f32.xlu0 %v2287_v47 }
 0x13f   : > { %vm502_vm9 = vcmp.eq.f32.partialorder %v2180_v50, %v478_v49  ;;  %vm496_vm10 = vcmp.eq.f32.partialorder %v2183_v53, %v460_v51  ;;  %v526_v49 = vcvt.s32.f32 %v524_v43  ;;  %v539_v51 = vand.u32 65535, %v2239_v20 }
 0x140   : > { %v518_v52 = vsel %vm502_vm9, %v2225_v12, 16  ;;  %v512_v48 = vsel %vm496_vm10, %v2225_v12, 16 }
 0x141   : > { %v2295_v54 = vsel %vm442_vm1, %v518_v52, 2147483647  ;;  %v2298_v55 = vsel %vm442_vm1, %v512_v48, 2147483647  ;;  %v541_v48 = vcvt.s32.f32 %v539_v51 }
 0x142   : > { %v600_v57 = vshra.s32 %v2298_v55, 16  ;;  %v690_v58 = vshra.s32 %v2295_v54, 16 }
 0x144   : > { %v2302_v60 = vcvt.s32.f32 %v600_v57  ;;  %v2304_v61 = vcvt.s32.f32 %v690_v58  ;;  %v554_v58 = vand.u32 65535, %v2253_v28  ;;  %v569_v28 = vand.u32 65535, %v2271_v38 }
 0x145   : > { %v586_v38 = vcvt.s32.f32 %v584_v36 }
 0x146   : > { %v481_v50 = vpop.xlane.xlu2 %480  ;;  %603 = vmin.xlane.f32.xlu2 %v2302_v60  ;;  %v463_v53 = vpop.xlane.xlu1 %462  ;;  %693 = vmin.xlane.f32.xlu0 %v2304_v61  ;;  %v556_v20 = vcvt.s32.f32 %v554_v58 }
 0x147   : > { %vm503_vm11 = vcmp.eq.f32.partialorder %v2190_v56, %v481_v50  ;;  %vm497_vm12 = vcmp.eq.f32.partialorder %v2193_v59, %v463_v53  ;;  %v661_v53 = vcvt.s32.f32 %v659_v15 }
 0x148   : > { %v519_v63 = vsel %vm503_vm11, %v2225_v12, 16  ;;  %v513_v1 = vsel %vm497_vm12, %v2225_v12, 16 }
 0x149   : > { %v2313_v2 = vsel %vm442_vm1, %v519_v63, 2147483647  ;;  %v2316_v3 = vsel %vm442_vm1, %v513_v1, 2147483647 }
 0x14a   : > { %v615_v6 = vshra.s32 %v2316_v3, 16  ;;  %v705_v7 = vshra.s32 %v2313_v2, 16 }
 0x14c   : > { %v2320_v8 = vcvt.s32.f32 %v615_v6  ;;  %v2322_v10 = vcvt.s32.f32 %v705_v7  ;;  %v676_v6 = vcvt.s32.f32 %v674_v26 }
 0x14e   : > { %v484_v56 = vpop.xlane.xlu2 %483  ;;  %618 = vmin.xlane.f32.xlu2 %v2320_v8  ;;  %v466_v59 = vpop.xlane.xlu1 %465  ;;  %708 = vmin.xlane.f32.xlu0 %v2322_v10 }
 0x14f   : > { %vm504_vm13 = vcmp.eq.f32.partialorder %v2200_v62, %v484_v56  ;;  %vm498_vm14 = vcmp.eq.f32.partialorder %v2203_v0, %v466_v59 }
 0x150   : > { %v520_v13 = vsel %vm504_vm13, %v2225_v12, 16  ;;  %v514_v14 = vsel %vm498_vm14, %v2225_v12, 16 }
 0x151   : > { %v2331_v16 = vsel %vm442_vm1, %v520_v13, 2147483647  ;;  %v2334_v18 = vsel %vm442_vm1, %v514_v14, 2147483647  ;;  %v689_v14 = vand.u32 65535, %v2295_v54  ;;  %v704_v54 = vand.u32 65535, %v2313_v2 }
 0x152   : > { %v630_v19 = vshra.s32 %v2334_v18, 16  ;;  %v720_v21 = vshra.s32 %v2331_v16, 16  ;;  %v719_v2 = vand.u32 65535, %v2331_v16 }
 0x154   : > { %v2338_v23 = vcvt.s32.f32 %v630_v19  ;;  %v2340_v24 = vcvt.s32.f32 %v720_v21 }
 0x156   : > { %v487_v62 = vpop.xlane.xlu2 %486  ;;  %633 = vmin.xlane.f32.xlu2 %v2338_v23  ;;  %v469_v0 = vpop.xlane.xlu1 %468  ;;  %723 = vmin.xlane.f32.xlu0 %v2340_v24 }
 0x157   : > { %vm505_vm15 = vcmp.eq.f32.partialorder %v2210_v4, %v487_v62  ;;  %vm499_vm2 = vcmp.eq.f32.partialorder %v2213_v5, %v469_v0  ;;  %v691_v62 = vcvt.s32.f32 %v689_v14 }
 0x158   : > { %v521_v25 = vsel %vm505_vm15, %v2225_v12, 16  ;;  %v515_v27 = vsel %vm499_vm2, %v2225_v12, 16 }
 0x159   : > { %v2349_v29 = vsel %vm442_vm1, %v521_v25, 2147483647  ;;  %v2352_v30 = vsel %vm442_vm1, %v515_v27, 2147483647 }
 0x15a   : > { %v645_v33 = vshra.s32 %v2352_v30, 16  ;;  %v735_v34 = vshra.s32 %v2349_v29, 16  ;;  %v734_v16 = vand.u32 65535, %v2349_v29 }
 0x15c   : > { %v2356_v35 = vcvt.s32.f32 %v645_v33  ;;  %v2358_v37 = vcvt.s32.f32 %v735_v34  ;;  %v706_v33 = vcvt.s32.f32 %v704_v54  ;;  %v736_v51 = vcvt.s32.f32 %v734_v16 }
 0x15e   : > { %v490_v4 = vpop.xlane.xlu2 %489  ;;  %648 = vmin.xlane.f32.xlu2 %v2356_v35  ;;  %738 = vmin.xlane.f32.xlu0 %v2358_v37 }
 0x15f   : > { %vm506_vm3 = vcmp.eq.f32.partialorder %v2220_v9, %v490_v4 }
 0x160   : > { %v522_v5 = vsel %vm506_vm3, %v2225_v12, 16 }
 0x161   : > { %v2365_v39 = vsel %vm442_vm1, %v522_v5, 2147483647 }
 0x162   : > { %v750_v40 = vshra.s32 %v2365_v39, 16  ;;  %v749_v29 = vand.u32 65535, %v2365_v39  ;;  %v2462_v39 = vshrl.u32 %v440_v11, 7 }
 0x164   : > { %v2368_v44 = vcvt.s32.f32 %v750_v40  ;;  %v721_v40 = vcvt.s32.f32 %v719_v2  ;;  %v766_v26 = vadd.s32 8, %v2462_v39  ;;  %v768_v16 = vadd.s32 24, %v2462_v39 }
 0x166   : > { %753 = vmin.xlane.f32.xlu0 %v2368_v44 }
 0x191   : > { %v2372_v46 = vpop.xlane.xlu0 %528 }
 0x192   : > { %vm530_vm4 = vcmp.eq.f32.partialorder %v2233_v17, %v2372_v46  ;;  %v535_v15 = vcvt.f32.s32 %v2372_v46  ;;  %v2012_v46 = vmov 0.0  }
 0x193   : > { %v531_v9 = vsel %vm530_vm4, %v526_v49, inf }
 0x194   : > { %532 = vmin.xlane.f32.xlu1 %v531_v9 }
 0x199   : > { %v2377_v52 = vpop.xlane.xlu0 %543 }
 0x19a   : > { %vm545_vm5 = vcmp.eq.f32.partialorder %v2242_v22, %v2377_v52  ;;  %v550_v11 = vcvt.f32.s32 %v2377_v52  ;;  %v774_v52 = vadd.s32 72, %v2462_v39 }
 0x19b   : > { %v546_v57 = vsel %vm545_vm5, %v541_v48, inf  ;;  %v751_v48 = vcvt.s32.f32 %v749_v29 }
 0x19c   : > { %547 = vmin.xlane.f32.xlu1 %v546_v57  ;;  %v973_v57 = vld [vmem:[%s3020_s1] sm:$0xff] }
 0x19f   : > { %v2383_v50 = vpop.xlane.xlu1 %663 }
 0x1a0   : > { %vm665_vm6 = vcmp.eq.f32.partialorder %v2257_v31, %v2383_v50  ;;  %v571_v31 = vcvt.s32.f32 %v569_v28 }
 0x1a1   : > { %v2385_v17 = vpop.xlane.xlu0 %558  ;;  %v666_v63 = vsel %vm665_vm6, %v661_v53, inf }
 0x1a2   : > { %vm560_vm7 = vcmp.eq.f32.partialorder %v2259_v32, %v2385_v17  ;;  %667 = vmin.xlane.f32.xlu2 %v666_v63  ;;  %v565_v14 = vcvt.f32.s32 %v2385_v17 }
 0x1a3   : > { %v561_v22 = vsel %vm560_vm7, %v556_v20, inf  ;;  %v536_v20 = vshll.u32 %v535_v15, 16 }
 0x1a4   : > { %562 = vmin.xlane.f32.xlu1 %v561_v22 }
 0x1a7   : > { %v2393_v1 = vpop.xlane.xlu1 %678 }
 0x1a8   : > { %vm680_vm8 = vcmp.eq.f32.partialorder %v2275_v41, %v2393_v1  ;;  %v599_v41 = vand.u32 65535, %v2298_v55  ;;  %v614_v55 = vand.u32 65535, %v2316_v3  ;;  %v629_v3 = vand.u32 65535, %v2334_v18 }
 0x1a9   : > { %v2395_v7 = vpop.xlane.xlu0 %573  ;;  %v681_v56 = vsel %vm680_vm8, %v676_v6, inf  ;;  %v644_v18 = vand.u32 65535, %v2352_v30 }
 0x1aa   : > { %vm575_vm9 = vcmp.eq.f32.partialorder %v2277_v42, %v2395_v7  ;;  %682 = vmin.xlane.f32.xlu2 %v681_v56  ;;  %v601_v21 = vcvt.s32.f32 %v599_v41  ;;  %v616_v27 = vcvt.s32.f32 %v614_v55  ;;  %v631_v5 = vcvt.s32.f32 %v629_v3 }
 0x1ab   : > { %v576_v32 = vsel %vm575_vm9, %v571_v31, inf  ;;  %v646_v9 = vcvt.s32.f32 %v644_v18  ;;  %v551_v56 = vshll.u32 %v550_v11, 16  ;;  %v670_v41 = vcvt.f32.s32 %v2383_v50 }
 0x1ac   : > { %577 = vmin.xlane.f32.xlu1 %v576_v32  ;;  %v1180_v32 = vadd.s32 4294967288, %v2225_v12  ;;  %v566_v3 = vshll.u32 %v565_v14, 16 }
 0x1b1   : > { %v2402_v59 = vpop.xlane.xlu0 %588 }
 0x1b2   : > { %vm590_vm10 = vcmp.eq.f32.partialorder %v2287_v47, %v2402_v59 }
 0x1b3   : > { %v591_v13 = vsel %vm590_vm10, %v586_v38, inf  ;;  %vm1182_vm10 = vcmask 130112  }
 0x1b4   : > { %592 = vmin.xlane.f32.xlu1 %v591_v13  ;;  %v767_v13 = vadd.s32 16, %v2462_v39 }
 0x1b9   : > { %v2408_v19 = vpop.xlane.xlu2 %603  ;;  %v2410_v42 = vpop.xlane.xlu0 %693 }
 0x1ba   : > { %vm605_vm11 = vcmp.eq.f32.partialorder %v2302_v60, %v2408_v19  ;;  %vm695_vm12 = vcmp.eq.f32.partialorder %v2304_v61, %v2410_v42 }
 0x1bb   : > { %v606_v45 = vsel %vm605_vm11, %v601_v21, inf  ;;  %v696_v47 = vsel %vm695_vm12, %v691_v62, inf }
 0x1bc   : > { %607 = vmin.xlane.f32.xlu0 %v606_v45  ;;  %697 = vmin.xlane.f32.xlu1 %v696_v47 }
 0x1c1   : > { %v2418_v0 = vpop.xlane.xlu2 %618  ;;  %v2420_v25 = vpop.xlane.xlu0 %708 }
 0x1c2   : > { %vm620_vm13 = vcmp.eq.f32.partialorder %v2320_v8, %v2418_v0  ;;  %vm710_vm14 = vcmp.eq.f32.partialorder %v2322_v10, %v2420_v25 }
 0x1c3   : > { %v621_v60 = vsel %vm620_vm13, %v616_v27, inf  ;;  %v711_v61 = vsel %vm710_vm14, %v706_v33, inf  ;;  %v671_v27 = vshll.u32 %v670_v41, 16 }
 0x1c4   : > { %622 = vmin.xlane.f32.xlu2 %v621_v60  ;;  %712 = vmin.xlane.f32.xlu0 %v711_v61 }
 0x1c9   : > { %v2428_v34 = vpop.xlane.xlu2 %633  ;;  %v2430_v4 = vpop.xlane.xlu0 %723 }
 0x1ca   : > { %vm635_vm15 = vcmp.eq.f32.partialorder %v2338_v23, %v2428_v34  ;;  %vm725_vm2 = vcmp.eq.f32.partialorder %v2340_v24, %v2430_v4 }
 0x1cb   : > { %v636_v8 = vsel %vm635_vm15, %v631_v5, inf  ;;  %v726_v10 = vsel %vm725_vm2, %v721_v40, inf  ;;  %v1184_v5 = vadd.s32 4294967280, %v2225_v12  ;;  %vm1186_vm15 = vcmask 195712  }
 0x1cc   : > { %637 = vmin.xlane.f32.xlu1 %v636_v8  ;;  %727 = vmin.xlane.f32.xlu2 %v726_v10  ;;  %v775_v10 = vadd.s32 80, %v2462_v39 }
 0x1d1   : > { %v2438_v43 = vpop.xlane.xlu2 %648  ;;  %v2440_v49 = vpop.xlane.xlu0 %738 }
 0x1d2   : > { %vm650_vm3 = vcmp.eq.f32.partialorder %v2356_v35, %v2438_v43  ;;  %vm740_vm4 = vcmp.eq.f32.partialorder %v2358_v37, %v2440_v49  ;;  %v974_v37 = vld [vmem:[%s3020_s1 + $0x8] sm:$0xff] }
 0x1d3   : > { %v651_v23 = vsel %vm650_vm3, %v646_v9, inf  ;;  %v741_v24 = vsel %vm740_vm4, %v736_v51, inf  ;;  %1037 = vmatpush.msra.mxu1 %v974_v37  ;;  %1722 = vmatpush.msra.mxu3 %v974_v37  ;;  %v685_v9 = vcvt.f32.s32 %v2393_v1  ;;  %v580_v51 = vcvt.f32.s32 %v2395_v7 }
 0x1d4   : > { %652 = vmin.xlane.f32.xlu0 %v651_v23  ;;  %742 = vmin.xlane.f32.xlu1 %v741_v24 }
 0x1d5   : > { %1038 = vmatpush.msra.mxu1 %v973_v57  ;;  %1723 = vmatpush.msra.mxu3 %v973_v57  ;;  %v686_v37 = vshll.u32 %v685_v9, 16 }
 0x1d9   : > { %v2450_v30 = vpop.xlane.xlu0 %753 }
 0x1da   : > { %vm755_vm5 = vcmp.eq.f32.partialorder %v2368_v44, %v2450_v30  ;;  %v2466_v44 = vstv %s1667_s14 }
 0x1db   : > { %v756_v35 = vsel %vm755_vm5, %v751_v48, inf  ;;  %v2471_v58 = vadd.s32 %v2466_v44, %v2462_v39  ;;  %v2481_v6 = vadd.s32 %v2466_v44, %v766_v26  ;;  %v2495_v45 = vadd.s32 %v2466_v44, %v774_v52 }
 0x1dc   : > { %757 = vmin.xlane.f32.xlu2 %v756_v35  ;;  %v2499_v50 = vadd.s32 %v2466_v44, %v767_v13  ;;  %v2524_v1 = vadd.s32 %v2466_v44, %v775_v10  ;;  %v2530_v35 = vadd.s32 %v2466_v44, %v768_v16 }
 0x1dd   : > { %vm798_vm6 = vcmp.lt.s32.totalorder %v2471_v58, 288  ;;  %vm799_vm9 = vcmp.lt.s32.totalorder %v2481_v6, 288  ;;  %vm3003_vm13 = vcmp.lt.s32.totalorder %v2495_v45, 288 }
 0x1de   : > { %vm3010_vm14 = vcmp.lt.s32.totalorder %v2499_v50, 288 }
 0x207   : > { %v533_v53 = vpop.xlane.xlu1 %532 }
 0x208   : > { %v534_v63 = vcvt.f32.s32 %v533_v53 }
 0x20a   : > { %v537_v22 = vadd.s32 %v536_v20, %v534_v63  ;;  %v581_v20 = vshll.u32 %v580_v51, 16  ;;  %v1196_v51 = vadd.s32 4294967256, %v2225_v12 }
 0x20c   : > { %vm814_vm7 = vcmp.eq.s32.totalorder %v2225_v12, %v537_v22  ;;  %v1179_v21 = vperm.slane %v537_v22, %v2225_v12  ;;  %v1188_v22 = vadd.s32 4294967272, %v2225_v12 }
 0x20d   : > { %vm862_vm8 = vmand %vm814_vm7, %vm798_vm6  ;;  %vm3001_vm7 = vcmp.lt.s32.totalorder %v2524_v1, 288 }
 0x20e   : > { %v1668_v28 = vsel %vm862_vm8, 1.0, %v2012_v46  ;;  %vm3009_vm8 = vcmp.lt.s32.totalorder %v2530_v35, 288 }
 0x20f   : > { %1684 = vmatmul.msk.f32.vlgmr.msra.gmra.mxu1 %vm442_vm1, %v1668_v28  ;;  %v548_v31 = vpop.xlane.xlu1 %547  ;;  %v934_v17 = vsel %vm442_vm1, %v1668_v28, 0.0 }
 0x210   : > { %v549_v36 = vcvt.f32.s32 %v548_v31  ;;  %v769_v31 = vadd.s32 32, %v2462_v39 }
 0x212   : > { %v552_v38 = vadd.s32 %v551_v56, %v549_v36  ;;  %v595_v56 = vcvt.f32.s32 %v2402_v59  ;;  %v2555_v59 = vadd.s32 %v2466_v44, %v769_v31 }
 0x214   : > { %v1181_v62 = vperm.slane %v552_v38, %v1180_v32  ;;  %vm815_vm11 = vcmp.eq.s32.totalorder %v2225_v12, %v552_v38  ;;  %v596_v14 = vshll.u32 %v595_v56, 16 }
 0x215   : > { %vm863_vm12 = vmand %vm815_vm11, %vm799_vm9  ;;  %v668_v55 = vpop.xlane.xlu2 %667 }
 0x216   : > { %v1183_v47 = vsel %vm1182_vm10, %v1181_v62, %v1179_v21  ;;  %v1669_v54 = vsel %vm863_vm12, 1.0, %v2012_v46  ;;  %v669_v33 = vcvt.f32.s32 %v668_v55  ;;  %vm1190_vm10 = vcmask 261312  }
 0x217   : > { %v935_v60 = vsel %vm442_vm1, %v1669_v54, 0.0  ;;  %1685 = vmatmul.msk.f32.gmra.mxu1 %vm442_vm1, %v1669_v54  ;;  %v563_v61 = vpop.xlane.xlu1 %562  ;;  %v1192_v62 = vadd.s32 4294967264, %v2225_v12  ;;  %v770_v54 = vadd.s32 40, %v2462_v39 }
 0x218   : > { %v936_v2 = vadd.f32 %v935_v60, %v934_v17  ;;  %v564_v40 = vcvt.f32.s32 %v563_v61  ;;  %v2505_v8 = vadd.s32 %v671_v27, %v669_v33  ;;  %v610_v27 = vcvt.f32.s32 %v2408_v19 }
 0x219   : > { %v700_v17 = vcvt.f32.s32 %v2410_v42  ;;  %v776_v33 = vadd.s32 88, %v2462_v39 }
 0x21a   : > { %v567_v18 = vadd.s32 %v566_v3, %v564_v40  ;;  %vm823_vm2 = vcmp.eq.s32.totalorder %v2225_v12, %v2505_v8 }
 0x21b   : > { %vm871_vm3 = vmand %vm823_vm2, %vm3003_vm13  ;;  %v701_v40 = vshll.u32 %v700_v17, 16 }
 0x21c   : > { %v1185_v23 = vperm.slane %v567_v18, %v1184_v5  ;;  %vm816_vm4 = vcmp.eq.s32.totalorder %v2225_v12, %v567_v18  ;;  %v2519_v24 = vsel %vm871_vm3, 1.0, %v2012_v46  ;;  %vm3008_vm3 = vcmp.lt.s32.totalorder %v2555_v59, 288 }
 0x21d   : > { %vm864_vm5 = vmand %vm816_vm4, %vm3010_vm14  ;;  %1693 = vmatmul.msk.f32.vlgmr.msra.gmra.mxu3 %vm442_vm1, %v2519_v24  ;;  %v683_v7 = vpop.xlane.xlu2 %682  ;;  %vm1194_vm4 = vcmask 326912   ;;  %v611_v5 = vshll.u32 %v610_v27, 16  ;;  %v2575_v18 = vadd.s32 %v2466_v44, %v776_v33 }
 0x21e   : > { %v1187_v29 = vsel %vm1186_vm15, %v1185_v23, %v1183_v47  ;;  %v1670_v48 = vsel %vm864_vm5, 1.0, %v2012_v46  ;;  %v684_v57 = vcvt.f32.s32 %v683_v7 }
 0x21f   : > { %v937_v15 = vsel %vm442_vm1, %v1670_v48, 0.0  ;;  %1686 = vmatmul.msk.f32.gmra.mxu1 %vm442_vm1, %v1670_v48  ;;  %v578_v53 = vpop.xlane.xlu1 %577 }
 0x220   : > { %v938_v63 = vadd.f32 %v937_v15, %v936_v2  ;;  %v579_v26 = vcvt.f32.s32 %v578_v53  ;;  %v2535_v11 = vadd.s32 %v686_v37, %v684_v57  ;;  %v2570_v2 = vadd.s32 %v2466_v44, %v770_v54 }
 0x221   : > { %v771_v37 = vadd.s32 48, %v2462_v39  ;;  %v715_v57 = vcvt.f32.s32 %v2420_v25  ;;  %v777_v15 = vadd.s32 96, %v2462_v39  ;;  %v778_v54 = vadd.s32 104, %v2462_v39 }
 0x222   : > { %v582_v28 = vadd.s32 %v581_v20, %v579_v26  ;;  %vm824_vm11 = vcmp.eq.s32.totalorder %v2225_v12, %v2535_v11 }
 0x223   : > { %vm872_vm12 = vmand %vm824_vm11, %vm3001_vm7  ;;  %vm3007_vm11 = vcmp.lt.s32.totalorder %v2570_v2, 288  ;;  %v2595_v25 = vadd.s32 %v2466_v44, %v771_v37 }
 0x224   : > { %v1189_v32 = vperm.slane %v582_v28, %v1188_v22  ;;  %vm817_vm15 = vcmp.eq.s32.totalorder %v2225_v12, %v582_v28  ;;  %v2547_v36 = vsel %vm872_vm12, 1.0, %v2012_v46  ;;  %vm1198_vm12 = vcmask 392512  }
 0x225   : > { %vm865_vm2 = vmand %vm817_vm15, %vm3009_vm8  ;;  %1694 = vmatmul.msk.f32.gmra.mxu3 %vm442_vm1, %v2547_v36  ;;  %vm3000_vm15 = vcmp.lt.s32.totalorder %v2575_v18, 288  ;;  %v716_v22 = vshll.u32 %v715_v57, 16  ;;  %v773_v57 = vadd.s32 64, %v2462_v39  ;;  %vm1230_vm8 = vcmask 917312  }
 0x226   : > { %v1191_v52 = vsel %vm1190_vm10, %v1189_v32, %v1187_v29  ;;  %v1671_v38 = vsel %vm865_vm2, 1.0, %v2012_v46  ;;  %v625_v29 = vcvt.f32.s32 %v2418_v0  ;;  %v2603_v32 = vadd.s32 %v2466_v44, %v777_v15 }
 0x227   : > { %v939_v13 = vsel %vm442_vm1, %v1671_v38, 0.0  ;;  %1687 = vmatmul.msk.f32.gmra.mxu1 %vm442_vm1, %v1671_v38  ;;  %v593_v41 = vpop.xlane.xlu1 %592  ;;  %v779_v15 = vadd.s32 112, %v2462_v39 }
 0x228   : > { %v940_v21 = vadd.f32 %v939_v13, %v938_v63  ;;  %v594_v47 = vcvt.f32.s32 %v593_v41  ;;  %v626_v0 = vshll.u32 %v625_v29, 16  ;;  %v760_v29 = vcvt.f32.s32 %v2450_v30 }
 0x22a   : > { %v597_v55 = vadd.s32 %v596_v14, %v594_v47  ;;  %v640_v14 = vcvt.f32.s32 %v2428_v34  ;;  %v772_v47 = vadd.s32 56, %v2462_v39  ;;  %v761_v30 = vshll.u32 %v760_v29, 16 }
 0x22c   : > { %v1193_v60 = vperm.slane %v597_v55, %v1192_v62  ;;  %vm818_vm5 = vcmp.eq.s32.totalorder %v2225_v12, %v597_v55  ;;  %v730_v55 = vcvt.f32.s32 %v2430_v4  ;;  %v641_v34 = vshll.u32 %v640_v14, 16 }
 0x22d   : > { %vm866_vm10 = vmand %vm818_vm5, %vm3008_vm3  ;;  %v2625_v4 = vadd.s32 %v2466_v44, %v772_v47  ;;  %v1208_v47 = vadd.s32 4294967232, %v2225_v12 }
 0x22e   : > { %v1195_v61 = vsel %vm1194_vm4, %v1193_v60, %v1191_v52  ;;  %v1672_v3 = vsel %vm866_vm10, 1.0, %v2012_v46  ;;  %v1200_v52 = vadd.s32 4294967248, %v2225_v12  ;;  %v731_v60 = vshll.u32 %v730_v55, 16 }
 0x22f   : > { %v941_v19 = vsel %vm442_vm1, %v1672_v3, 0.0  ;;  %1688 = vmatmul.msk.f32.gmra.mxu1 %vm442_vm1, %v1672_v3  ;;  %v698_v42 = vpop.xlane.xlu1 %697  ;;  %v608_v10 = vpop.xlane.xlu0 %607 }
 0x230   : > { %v942_v16 = vadd.f32 %v941_v19, %v940_v21  ;;  %v699_v9 = vcvt.f32.s32 %v698_v42  ;;  %v609_v23 = vcvt.f32.s32 %v608_v10  ;;  %v2633_v19 = vadd.s32 %v2466_v44, %v778_v54 }
 0x231   : > { %v1204_v42 = vadd.s32 4294967240, %v2225_v12 }
 0x232   : > { %v2579_v7 = vadd.s32 %v701_v40, %v699_v9  ;;  %v612_v48 = vadd.s32 %v611_v5, %v609_v23  ;;  %v745_v23 = vcvt.f32.s32 %v2440_v49 }
 0x234   : > { %v1197_v53 = vperm.slane %v612_v48, %v1196_v51  ;;  %vm819_vm2 = vcmp.eq.s32.totalorder %v2225_v12, %v612_v48  ;;  %vm825_vm4 = vcmp.eq.s32.totalorder %v2225_v12, %v2579_v7  ;;  %v655_v51 = vcvt.f32.s32 %v2438_v43 }
 0x235   : > { %vm867_vm5 = vmand %vm819_vm2, %vm3007_vm11  ;;  %vm1202_vm2 = vcmask 458112   ;;  %v746_v49 = vshll.u32 %v745_v23, 16  ;;  %vm1226_vm11 = vcmask 851712  }
 0x236   : > { %v1199_v20 = vsel %vm1198_vm12, %v1197_v53, %v1195_v61  ;;  %v1673_v63 = vsel %vm867_vm5, 1.0, %v2012_v46  ;;  %vm873_vm10 = vmand %vm825_vm4, %vm3000_vm15  ;;  %vm3006_vm12 = vcmp.lt.s32.totalorder %v2595_v25, 288  ;;  %vm3002_vm4 = vcmp.lt.s32.totalorder %v2603_v32, 288 }
 0x237   : > { %v623_v26 = vpop.xlane.xlu2 %622  ;;  %v943_v28 = vsel %vm442_vm1, %v1673_v63, 0.0  ;;  %1689 = vmatmul.msk.f32.gmra.mxu1 %vm442_vm1, %v1673_v63  ;;  %v2600_v31 = vsel %vm873_vm10, 1.0, %v2012_v46  ;;  %v713_v56 = vpop.xlane.xlu0 %712  ;;  %v656_v43 = vshll.u32 %v655_v51, 16 }
 0x238   : > { %v624_v38 = vcvt.f32.s32 %v623_v26  ;;  %v944_v13 = vadd.f32 %v943_v28, %v942_v16  ;;  %1695 = vmatmul.msk.f32.gmra.mxu3 %vm442_vm1, %v2600_v31  ;;  %v714_v41 = vcvt.f32.s32 %v713_v56  ;;  %v2658_v26 = vadd.s32 %v2466_v44, %v773_v57 }
 0x239   : > { %v1220_v28 = vadd.s32 4294967208, %v2225_v12 }
 0x23a   : > { %v627_v21 = vadd.s32 %v626_v0, %v624_v38  ;;  %v2609_v62 = vadd.s32 %v716_v22, %v714_v41  ;;  %v1212_v0 = vadd.s32 4294967224, %v2225_v12  ;;  %v2667_v41 = vadd.s32 %v2466_v44, %v779_v15 }
 0x23c   : > { %v1201_v27 = vperm.slane %v627_v21, %v1200_v52  ;;  %vm820_vm5 = vcmp.eq.s32.totalorder %v2225_v12, %v627_v21  ;;  %vm826_vm10 = vcmp.eq.s32.totalorder %v2225_v12, %v2609_v62  ;;  %v1213_v54 = vperm.slane %v2505_v8, %v1212_v0 }
 0x23d   : > { %vm868_vm15 = vmand %vm820_vm5, %vm3006_vm12  ;;  %vm1222_vm12 = vcmask 786112   ;;  %v953_v0 = vsel %vm442_vm1, %v2547_v36, 0.0 }
 0x23e   : > { %v1203_v17 = vsel %vm1202_vm2, %v1201_v27, %v1199_v20  ;;  %v1674_v33 = vsel %vm868_vm15, 1.0, %v2012_v46  ;;  %vm874_vm7 = vmand %vm826_vm10, %vm3002_vm4  ;;  %vm1206_vm15 = vcmask 523712   ;;  %vm3004_vm2 = vcmp.lt.s32.totalorder %v2633_v19, 288 }
 0x23f   : > { %v638_v61 = vpop.xlane.xlu1 %637  ;;  %v728_v3 = vpop.xlane.xlu2 %727  ;;  %v945_v5 = vsel %vm442_vm1, %v1674_v33, 0.0  ;;  %1690 = vmatmul.msk.f32.gmra.mxu1 %vm442_vm1, %v1674_v33  ;;  %v2630_v40 = vsel %vm874_vm7, 1.0, %v2012_v46  ;;  %vm3005_vm7 = vcmp.lt.s32.totalorder %v2625_v4, 288  ;;  %v1216_v20 = vadd.s32 4294967216, %v2225_v12 }
 0x240   : > { %v639_v10 = vcvt.f32.s32 %v638_v61  ;;  %v729_v16 = vcvt.f32.s32 %v728_v3  ;;  %v946_v9 = vadd.f32 %v945_v5, %v944_v13  ;;  %1696 = vmatmul.msk.f32.gmra.mxu3 %vm442_vm1, %v2630_v40  ;;  %v951_v27 = vsel %vm442_vm1, %v2519_v24, 0.0 }
 0x241   : > { %v1217_v33 = vperm.slane %v2535_v11, %v1216_v20  ;;  %v1228_v3 = vadd.s32 4294967192, %v2225_v12  ;;  %v1232_v5 = vadd.s32 4294967184, %v2225_v12  ;;  %v1236_v11 = vadd.s32 4294967176, %v2225_v12 }
 0x242   : > { %v642_v48 = vadd.s32 %v641_v34, %v639_v10  ;;  %v2641_v37 = vadd.s32 %v731_v60, %v729_v16  ;;  %v1224_v34 = vadd.s32 4294967200, %v2225_v12  ;;  %v1221_v10 = vperm.slane %v2579_v7, %v1220_v28 }
 0x243   : > { %v955_v28 = vsel %vm442_vm1, %v2600_v31, 0.0  ;;  %v957_v36 = vsel %vm442_vm1, %v2630_v40, 0.0 }
 0x244   : > { %v1205_v53 = vperm.slane %v642_v48, %v1204_v42  ;;  %vm821_vm5 = vcmp.eq.s32.totalorder %v2225_v12, %v642_v48  ;;  %vm827_vm10 = vcmp.eq.s32.totalorder %v2225_v12, %v2641_v37  ;;  %v1225_v23 = vperm.slane %v2609_v62, %v1224_v34 }
 0x245   : > { %vm869_vm4 = vmand %vm821_vm5, %vm3005_vm7  ;;  %vm1214_vm5 = vcmask 654912   ;;  %vm1218_vm7 = vcmask 720512   ;;  %v1229_v15 = vperm.slane %v2641_v37, %v1228_v3 }
 0x246   : > { %v1207_v63 = vsel %vm1206_vm15, %v1205_v53, %v1203_v17  ;;  %v1675_v22 = vsel %vm869_vm4, 1.0, %v2012_v46  ;;  %vm875_vm13 = vmand %vm827_vm10, %vm3004_vm2  ;;  %v780_v17 = vadd.s32 120, %v2462_v39  ;;  %vm1210_vm4 = vcmask 589312  }
 0x247   : > { %v743_v56 = vpop.xlane.xlu1 %742  ;;  %v947_v52 = vsel %vm442_vm1, %v1675_v22, 0.0  ;;  %1691 = vmatmul.msk.f32.gmra.mxu1 %vm442_vm1, %v1675_v22  ;;  %v2664_v38 = vsel %vm875_vm13, 1.0, %v2012_v46  ;;  %v653_v13 = vpop.xlane.xlu0 %652  ;;  %vm806_vm13 = vcmp.lt.s32.totalorder %v2658_v26, 288  ;;  %vm812_vm15 = vcmp.lt.s32.totalorder %v2667_v41, 288 }
 0x248   : > { %v744_v14 = vcvt.f32.s32 %v743_v56  ;;  %v948_v21 = vadd.f32 %v947_v52, %v946_v9  ;;  %1697 = vmatmul.msk.f32.gmra.mxu3 %vm442_vm1, %v2664_v38  ;;  %v654_v55 = vcvt.f32.s32 %v653_v13  ;;  %v2687_v39 = vadd.s32 %v2466_v44, %v780_v17 }
 0x24a   : > { %v747_v60 = vadd.s32 %v746_v49, %v744_v14  ;;  %v657_v61 = vadd.s32 %v656_v43, %v654_v55 }
 0x24c   : > { %v1209_v8 = vperm.slane %v657_v61, %v1208_v47  ;;  %vm822_vm10 = vcmp.eq.s32.totalorder %v2225_v12, %v657_v61  ;;  %vm828_vm2 = vcmp.eq.s32.totalorder %v2225_v12, %v747_v60  ;;  %v1233_v53 = vperm.slane %v747_v60, %v1232_v5 }
 0x24d   : > { %vm870_vm3 = vmand %vm822_vm10, %vm806_vm13  ;;  %vm3027_vm10 = vcmp.lt.s32.totalorder %v2495_v45, 288 }
 0x24e   : > { %v1211_v24 = vsel %vm1210_vm4, %v1209_v8, %v1207_v63  ;;  %v1676_v42 = vsel %vm870_vm3, 1.0, %v2012_v46  ;;  %vm876_vm14 = vmand %vm828_vm2, %vm812_vm15  ;;  %vm1234_vm3 = vcmask 982912   ;;  %vm813_vm2 = vcmp.lt.s32.totalorder %v2687_v39, 288 }
 0x24f   : > { %v1215_v16 = vsel %vm1214_vm5, %v1213_v54, %v1211_v24  ;;  %v758_v9 = vpop.xlane.xlu2 %757  ;;  %v949_v51 = vsel %vm442_vm1, %v1676_v42, 0.0  ;;  %1692 = vmatmul.msk.f32.gmra.mxu1 %vm442_vm1, %v1676_v42  ;;  %v1682_v44 = vsel %vm876_vm14, 1.0, %v2012_v46  ;;  %vm1238_vm14 = vcmask 1048512  }
 0x250   : > { %v1219_v29 = vsel %vm1218_vm7, %v1217_v33, %v1215_v16  ;;  %v759_v48 = vcvt.f32.s32 %v758_v9  ;;  %v950_v57 = vadd.f32 %v949_v51, %v948_v21  ;;  %1698 = vmatmul.msk.f32.gmra.mxu3 %vm442_vm1, %v1682_v44  ;;  %v961_v14 = vsel %vm442_vm1, %v1682_v44, 0.0  ;;  %v1838_v9 = vld [vmem:[%s2113_s20 + $0x10] sm:$0xff] }
 0x251   : > { %v1223_v7 = vsel %vm1222_vm12, %v1221_v10, %v1219_v29  ;;  %v1837_v10 = vld [vmem:[%s2113_s20] sm:$0xff]  ;;  %vm3025_vm4 = vcmp.lt.s32.totalorder %v2595_v25, 288  ;;  %vm3026_vm5 = vcmp.lt.s32.totalorder %v2625_v4, 288 }
 0x252   : > { %v762_v43 = vadd.s32 %v761_v30, %v759_v48  ;;  %v1227_v49 = vsel %vm1226_vm11, %v1225_v23, %v1223_v7  ;;  %v952_v62 = vadd.f32 %v951_v27, %v950_v57  ;;  %v1839_v23 = vld [vmem:[%s2113_s20 + $0x18] sm:$0xff]  ;;  %vm3023_vm11 = vcmp.lt.s32.totalorder %v2555_v59, 288 }
 0x253   : > { %v1231_v20 = vsel %vm1230_vm8, %v1229_v15, %v1227_v49  ;;  %vm971_vm8 = vcmask 122880  }
 0x254   : > { %v1235_v63 = vsel %vm1234_vm3, %v1233_v53, %v1231_v20  ;;  %v1237_v37 = vperm.slane %v762_v43, %v1236_v11  ;;  %v954_v22 = vadd.f32 %v953_v0, %v952_v62  ;;  %vm829_vm12 = vcmp.eq.s32.totalorder %v2225_v12, %v762_v43  ;;  %v1836_v11 = vld [vmem:[%s2113_s20 + $0x8] sm:$0xff]  ;;  %v1840_v53 = vld [vmem:[%s2113_s20 + $0x20] sm:$0xff] }
 0x255   : > { %vm877_vm7 = vmand %vm829_vm12, %vm813_vm2  ;;  %v959_v12 = vsel %vm442_vm1, %v2664_v38, 0.0  ;;  %v1841_v62 = vld [vmem:[%s2113_s20 + $0x28] sm:$0xff]  ;;  %vm3028_vm3 = vcmp.lt.s32.totalorder %v2524_v1, 288  ;;  %vm3030_vm12 = vcmp.lt.s32.totalorder %v2603_v32, 288 }
 0x256   : > { %v1239_v30 = vsel %vm1238_vm14, %v1237_v37, %v1235_v63  ;;  %v956_v56 = vadd.f32 %v955_v28, %v954_v22  ;;  %v1683_v52 = vsel %vm877_vm7, 1.0, %v2012_v46  ;;  %vm3029_vm14 = vcmp.lt.s32.totalorder %v2575_v18, 288 }
 0x257   : > { %1240 = vst [vmem:[%s3012_s16] sm:$0x1] %v1239_v30  ;;  %v963_v46 = vsel %vm442_vm1, %v1683_v52, 0.0 }
 0x258   : > { %v958_v13 = vadd.f32 %v957_v36, %v956_v56  ;;  %1699 = vmatmul.msk.f32.gmra.mxu3 %vm442_vm1, %v1683_v52  ;;  %vm3021_vm1 = vcmp.lt.s32.totalorder %v2499_v50, 288  ;;  %v1842_v50 = vld [vmem:[%s2113_s20 + $0x30] sm:$0xff] }
 0x25a   : > { %v960_v31 = vadd.f32 %v959_v12, %v958_v13 }
 0x25c   : > { %v962_v21 = vadd.f32 %v961_v14, %v960_v31  ;;  %v1843_v31 = vld [vmem:[%s2113_s20 + $0x38] sm:$0xff] }
 0x25e   : > { %v964_v47 = vadd.f32 %v963_v46, %v962_v21 }
 0x260   : > { %v965_v40 = vrot.slane %v964_v47, 4 }
 0x262   : > { %v966_v55 = vadd.f32 %v965_v40, %v964_v47 }
 0x264   : > { %v967_v54 = vrot.slane %v966_v55, 2 }
 0x266   : > { %v968_v27 = vadd.f32 %v967_v54, %v966_v55  ;;  %v1844_v54 = vld [vmem:[%s2113_s20 + $0x48] sm:$0xff] }
 0x268   : > { %v969_v34 = vrot.slane %v968_v27, 1 }
 0x26a   : > { %v970_v17 = vadd.f32 %v969_v34, %v968_v27 }
 0x26c   : > { %972 = vst.msk [vmem:[%s3011_s17] sm:$0x1] %vm971_vm8, %v970_v17 }
 0x28c   : > { %v1040_v33 = vpop.f32.mrf.mxu1 }
 0x28d   : > { %1241 = vst.msk [vmem:[%s2727_s19] sm:$0xff] %vm363_vm0, %v1040_v33  ;;  %v1088_v16 = vsub.f32 %v1040_v33, %v1837_v10  ;;  %v1845_v33 = vld [vmem:[%s2113_s20 + $0x50] sm:$0xff]  ;;  %v1847_v10 = vld [vmem:[%s2113_s20 + $0x40] sm:$0xff] }
 0x28f   : > { %v1104_v15 = vsel %vm798_vm6, %v1088_v16, 0.0  ;;  %vm3024_vm6 = vcmp.lt.s32.totalorder %v2570_v2, 288 }
 0x290   : > { %v1120_v20 = vmul.f32 %v1104_v15, %v1104_v15 }
 0x292   : > { %v1136_v56 = vsel %vm363_vm0, %v1120_v20, 0.0  ;;  %v1850_v20 = vld [vmem:[%s2113_s20 + $0x70] sm:$0xff] }
 0x294   : > { %v1043_v38 = vpop.f32.mrf.mxu1 }
 0x295   : > { %1242 = vst.msk [vmem:[%s2727_s19 + $0x8] sm:$0xff] %vm363_vm0, %v1043_v38  ;;  %v1089_v42 = vsub.f32 %v1043_v38, %v1836_v11  ;;  %v1846_v11 = vld [vmem:[%s2113_s20 + $0x58] sm:$0xff] }
 0x297   : > { %v1105_v44 = vsel %vm799_vm9, %v1089_v42, 0.0  ;;  %vm3022_vm9 = vcmp.lt.s32.totalorder %v2530_v35, 288 }
 0x298   : > { %v1121_v6 = vmul.f32 %v1105_v44, %v1105_v44  ;;  %v1848_v44 = vld [vmem:[%s2113_s20 + $0x60] sm:$0xff] }
 0x29a   : > { %v1137_v22 = vsel %vm363_vm0, %v1121_v6, 0.0 }
 0x29b   : > { %v1138_v13 = vadd.f32 %v1137_v22, %v1136_v56 }
 0x29c   : > { %v1046_v60 = vpop.f32.mrf.mxu1 }
 0x29d   : > { %1243 = vst.msk [vmem:[%s2727_s19 + $0x10] sm:$0xff] %vm363_vm0, %v1046_v60  ;;  %v1090_v51 = vsub.f32 %v1046_v60, %v1838_v9 }
 0x29f   : > { %v1106_v7 = vsel %vm3021_vm1, %v1090_v51, 0.0 }
 0x2a0   : > { %v2735_v61 = vpop.f32.mrf.mxu3  ;;  %v1122_v63 = vmul.f32 %v1106_v7, %v1106_v7  ;;  %v1849_v7 = vld [vmem:[%s2113_s20 + $0x68] sm:$0xff] }
 0x2a1   : > { %1250 = vst.msk [vmem:[%s2727_s19 + $0x48] sm:$0xff] %vm363_vm0, %v2735_v61  ;;  %v1097_v25 = vsub.f32 %v2735_v61, %v1844_v54 }
 0x2a2   : > { %v1139_v52 = vsel %vm363_vm0, %v1122_v63, 0.0 }
 0x2a3   : > { %v1140_v46 = vadd.f32 %v1139_v52, %v1138_v13  ;;  %v1851_v13 = vld [vmem:[%s2113_s20 + $0x78] sm:$0xff]  ;;  %s325_s20 = scalar_select %p324_p11, %s2074_s28, 2 }
 0x2a4   : > { %v1049_v3 = vpop.f32.mrf.mxu1 }
 0x2a5   : > { %1244 = vst.msk [vmem:[%s2727_s19 + $0x18] sm:$0xff] %vm363_vm0, %v1049_v3  ;;  %v1091_v29 = vsub.f32 %v1049_v3, %v1839_v23  ;;  %s326_s29 = scalar_lea.vmem %s2999_s7, %s325_s20 }
 0x2a7   : > { %v1107_v49 = vsel %vm3022_vm9, %v1091_v29, 0.0 }
 0x2a8   : > { %v2742_v5 = vpop.f32.mrf.mxu3  ;;  %v1123_v28 = vmul.f32 %v1107_v49, %v1107_v49 }
 0x2a9   : > { %1251 = vst.msk [vmem:[%s2727_s19 + $0x50] sm:$0xff] %vm363_vm0, %v2742_v5  ;;  %v1098_v38 = vsub.f32 %v2742_v5, %v1845_v33 }
 0x2aa   : > { %v1141_v2 = vsel %vm363_vm0, %v1123_v28, 0.0 }
 0x2ab   : > { %v1142_v27 = vadd.f32 %v1141_v2, %v1140_v46  ;;  %v1114_v9 = vsel %vm3028_vm3, %v1098_v38, 0.0 }
 0x2ac   : > { %v1052_v8 = vpop.f32.mrf.mxu1 }
 0x2ad   : > { %1245 = vst.msk [vmem:[%s2727_s19 + $0x20] sm:$0xff] %vm363_vm0, %v1052_v8  ;;  %v1092_v43 = vsub.f32 %v1052_v8, %v1840_v53 }
 0x2af   : > { %v1108_v58 = vsel %vm3023_vm11, %v1092_v43, 0.0  ;;  %v1130_v43 = vmul.f32 %v1114_v9, %v1114_v9 }
 0x2b0   : > { %v1124_v36 = vmul.f32 %v1108_v58, %v1108_v58 }
 0x2b2   : > { %v1143_v40 = vsel %vm363_vm0, %v1124_v36, 0.0 }
 0x2b3   : > { %v1144_v60 = vadd.f32 %v1143_v40, %v1142_v27 }
 0x2b4   : > { %v1055_v24 = vpop.f32.mrf.mxu1 }
 0x2b5   : > { %1246 = vst.msk [vmem:[%s2727_s19 + $0x28] sm:$0xff] %vm363_vm0, %v1055_v24  ;;  %v1093_v0 = vsub.f32 %v1055_v24, %v1841_v62  ;;  %v1113_v24 = vsel %vm3027_vm10, %v1097_v25, 0.0 }
 0x2b6   : > { %v1129_v29 = vmul.f32 %v1113_v24, %v1113_v24 }
 0x2b7   : > { %v1109_v30 = vsel %vm3024_vm6, %v1093_v0, 0.0 }
 0x2b8   : > { %v1125_v21 = vmul.f32 %v1109_v30, %v1109_v30  ;;  %v1153_v26 = vsel %vm363_vm0, %v1129_v29, 0.0 }
 0x2ba   : > { %v1145_v34 = vsel %vm363_vm0, %v1125_v21, 0.0 }
 0x2bb   : > { %v2757_v48 = vpop.f32.mrf.mxu3  ;;  %v1146_v61 = vadd.f32 %v1145_v34, %v1144_v60 }
 0x2bc   : > { %1252 = vst.msk [vmem:[%s2727_s19 + $0x58] sm:$0xff] %vm363_vm0, %v2757_v48  ;;  %v1058_v57 = vpop.f32.mrf.mxu1  ;;  %v1099_v42 = vsub.f32 %v2757_v48, %v1846_v11 }
 0x2bd   : > { %1247 = vst.msk [vmem:[%s2727_s19 + $0x30] sm:$0xff] %vm363_vm0, %v1058_v57  ;;  %v1094_v37 = vsub.f32 %v1058_v57, %v1842_v50  ;;  %v1155_v50 = vsel %vm363_vm0, %v1130_v43, 0.0 }
 0x2be   : > { %v1115_v48 = vsel %vm3029_vm14, %v1099_v42, 0.0 }
 0x2bf   : > { %v1110_v12 = vsel %vm3025_vm4, %v1094_v37, 0.0  ;;  %v1131_v0 = vmul.f32 %v1115_v48, %v1115_v48 }
 0x2c0   : > { %v1126_v55 = vmul.f32 %v1110_v12, %v1110_v12 }
 0x2c1   : > { %v1157_v28 = vsel %vm363_vm0, %v1131_v0, 0.0 }
 0x2c2   : > { %v1147_v3 = vsel %vm363_vm0, %v1126_v55, 0.0 }
 0x2c3   : > { %v1076_v35 = vpop.f32.mrf.mxu3  ;;  %v1148_v51 = vadd.f32 %v1147_v3, %v1146_v61 }
 0x2c4   : > { %1253 = vst.msk [vmem:[%s2727_s19 + $0x60] sm:$0xff] %vm363_vm0, %v1076_v35  ;;  %v1061_v59 = vpop.f32.mrf.mxu1  ;;  %v1100_v23 = vsub.f32 %v1076_v35, %v1848_v44 }
 0x2c5   : > { %v1095_v14 = vsub.f32 %v1061_v59, %v1843_v31  ;;  %1248 = vst.msk [vmem:[%s2727_s19 + $0x38] sm:$0xff] %vm363_vm0, %v1061_v59 }
 0x2c6   : > { %v1116_v6 = vsel %vm3030_vm12, %v1100_v23, 0.0 }
 0x2c7   : > { %v1111_v47 = vsel %vm3026_vm5, %v1095_v14, 0.0  ;;  %v1132_v37 = vmul.f32 %v1116_v6, %v1116_v6 }
 0x2c8   : > { %v1127_v17 = vmul.f32 %v1111_v47, %v1111_v47 }
 0x2c9   : > { %v1159_v56 = vsel %vm363_vm0, %v1132_v37, 0.0 }
 0x2ca   : > { %v1149_v5 = vsel %vm363_vm0, %v1127_v17, 0.0 }
 0x2cb   : > { %v1079_v4 = vpop.f32.mrf.mxu3  ;;  %v1150_v15 = vadd.f32 %v1149_v5, %v1148_v51 }
 0x2cc   : > { %1254 = vst.msk [vmem:[%s2727_s19 + $0x68] sm:$0xff] %vm363_vm0, %v1079_v4  ;;  %v1064_v8 = vpop.f32.mrf.mxu1  ;;  %v1101_v53 = vsub.f32 %v1079_v4, %v1849_v7 }
 0x2cd   : > { %v1096_v16 = vsub.f32 %v1064_v8, %v1847_v10  ;;  %1249 = vst.msk [vmem:[%s2727_s19 + $0x40] sm:$0xff] %vm363_vm0, %v1064_v8 }
 0x2cf   : > { %v1112_v45 = vsel %vm806_vm13, %v1096_v16, 0.0  ;;  %vm3031_vm13 = vcmp.lt.s32.totalorder %v2633_v19, 288 }
 0x2d0   : > { %v1128_v57 = vmul.f32 %v1112_v45, %v1112_v45  ;;  %v1117_v18 = vsel %vm3031_vm13, %v1101_v53, 0.0 }
 0x2d1   : > { %v1133_v30 = vmul.f32 %v1117_v18, %v1117_v18 }
 0x2d2   : > { %v1151_v1 = vsel %vm363_vm0, %v1128_v57, 0.0 }
 0x2d3   : > { %v1152_v49 = vadd.f32 %v1151_v1, %v1150_v15  ;;  %v1082_v62 = vpop.f32.mrf.mxu3  ;;  %v1161_v19 = vsel %vm363_vm0, %v1133_v30, 0.0 }
 0x2d4   : > { %v1102_v63 = vsub.f32 %v1082_v62, %v1850_v20  ;;  %1255 = vst.msk [vmem:[%s2727_s19 + $0x70] sm:$0xff] %vm363_vm0, %v1082_v62 }
 0x2d5   : > { %v1154_v58 = vadd.f32 %v1153_v26, %v1152_v49 }
 0x2d6   : > { %v1118_v22 = vsel %vm812_vm15, %v1102_v63, 0.0  ;;  %vm1177_vm15 = vcmask 0  }
 0x2d7   : > { %v1156_v32 = vadd.f32 %v1155_v50, %v1154_v58  ;;  %v1134_v52 = vmul.f32 %v1118_v22, %v1118_v22 }
 0x2d9   : > { %v1158_v35 = vadd.f32 %v1157_v28, %v1156_v32  ;;  %v1163_v14 = vsel %vm363_vm0, %v1134_v52, 0.0 }
 0x2db   : > { %v1085_v36 = vpop.f32.mrf.mxu3  ;;  %v1160_v59 = vadd.f32 %v1159_v56, %v1158_v35 }
 0x2dc   : > { %v1103_v12 = vsub.f32 %v1085_v36, %v1851_v13  ;;  %1256 = vst.msk [vmem:[%s2727_s19 + $0x78] sm:$0xff] %vm363_vm0, %v1085_v36 }
 0x2dd   : > { %v1162_v31 = vadd.f32 %v1161_v19, %v1160_v59 }
 0x2de   : > { %v1119_v41 = vsel %vm813_vm2, %v1103_v12, 0.0 }
 0x2df   : > { %v1135_v2 = vmul.f32 %v1119_v41, %v1119_v41  ;;  %v1164_v21 = vadd.f32 %v1163_v14, %v1162_v31 }
 0x2e1   : > { %v1165_v46 = vsel %vm363_vm0, %v1135_v2, 0.0 }
 0x2e2   : > { %v1166_v47 = vadd.f32 %v1165_v46, %v1164_v21 }
 0x2e4   : > { %1167 = vadd.xlane.f32.xlu0 %v1166_v47 }
 0x357   : > { %v1168_v40 = vpop.xlane.xlu0 %1167 }
 0x358   : > { %v1169_v55 = vrot.slane %v1168_v40, 4 }
 0x35a   : > { %v1170_v54 = vadd.f32 %v1169_v55, %v1168_v40 }
 0x35c   : > { %v1171_v25 = vrot.slane %v1170_v54, 2 }
 0x35e   : > { %v1172_v27 = vadd.f32 %v1171_v25, %v1170_v54 }
 0x360   : > { %v1173_v34 = vrot.slane %v1172_v27, 1 }
 0x362   : > { %v1174_v39 = vadd.f32 %v1173_v34, %v1172_v27 }
 0x364   : > { %1724 = vpush %v1174_v39 }
 0x393   : > { %1274 = sbr.rel (!%p2091_p5) target bundleno = 968 (0x3c8), region = 40 }
 0x395   : > { %s1725_s8 = spop %1724 }
 0x396   : > { %v1176_v17 = vstv %s1725_s8 }
 0x397   : > { %1178 = vst.msk [vmem:[%s326_s29] sm:$0x1] %vm1177_vm15, %v1176_v17 }
 0x398   : > { %s3046_s18 = smov (!%p1277_p12, %s1276_s18), 16 }
 0x399   : > { %s1702_s20 = sshll.u32 %s3046_s18, 3 }
 0x39a   : > { %p1705_p13 = scmp.eq.s32.totalorder %s1702_s20, 0 }
 0x39b   : > { %s2858_s21 = sshrl.u32 (!%p1705_p13), %s3046_s18, 4 }
 0x39c   : > { %1285 = sbr.rel (%p1705_p13) target bundleno = 968 (0x3c8), region = 44  ;;  %p1706_p0 = scmp.le.s32.totalorder (!%p1705_p13), %s2858_s21, 0 }
 0x3a1   : > { %1577 = sbr.rel (%p1706_p0) target bundleno = 951 (0x3b7), region = 166  ;;  %s3032_s15 = smov (!%p1706_p0), %s2852_s0 }
 0x3a2   : > { %s3033_s14 = smov (!%p1706_p0), %s2727_s19  ;;  %s2867_s16 = smov (!%p1706_p0), 0  }
 0x3a3   : > { %s2869_s17 = smov (!%p1706_p0), 0  }
 0x3a6 LB: >> { %v1378_v33 = vld [vmem:[%s1986_s14] sm:$0xff]  ;;  %v1380_v38 = vld [vmem:[%s1986_s14 + $0x8] sm:$0xff]  ;;  %v1382_v60 = vld [vmem:[%s1986_s14 + $0x10] sm:$0xff]  ;;  %s1410_s22 = sadd.s32 1, %s1990_s16  ;;  %s1372_s17 = sadd.s32 1, %s1994_s17   ;;  %s1994_s17 = sphi %s2869_s17, %s1372_s17   ;;  %s1990_s16 = sphi %s2867_s16, %s3036_s16   ;;  %s1986_s14 = sphi %s3033_s14, %s3035_s14   ;;  %s1982_s15 = sphi %s3032_s15, %s3034_s15  }
 0x3a7   : >> { %1379 = vst [vmem:[%s1982_s15] sm:$0xff] %v1378_v33  ;;  %v1384_v4 = vld [vmem:[%s1986_s14 + $0x18] sm:$0xff]  ;;  %p1411_p1 = scmp.ge.s32.totalorder %s1410_s22, %s2858_s21  ;;  %v1386_v3 = vld [vmem:[%s1986_s14 + $0x20] sm:$0xff]  ;;  %v1388_v8 = vld [vmem:[%s1986_s14 + $0x28] sm:$0xff]  ;;  %p1371_p2 = scmp.ge.s32.totalorder %s1372_s17, %s2858_s21 }
 0x3a8   : >> { %1381 = vst [vmem:[%s1982_s15 + $0x8] sm:$0xff] %v1380_v38  ;;  %v1390_v24 = vld [vmem:[%s1986_s14 + $0x30] sm:$0xff]  ;;  %v1392_v61 = vld [vmem:[%s1986_s14 + $0x38] sm:$0xff]  ;;  %v1394_v11 = vld [vmem:[%s1986_s14 + $0x40] sm:$0xff] }
 0x3a9   : >> { %1383 = vst [vmem:[%s1982_s15 + $0x10] sm:$0xff] %v1382_v60  ;;  %s3048_s22 = smov (%p1411_p1, %s1410_s22), 0  ;;  %v1396_v42 = vld [vmem:[%s1986_s14 + $0x48] sm:$0xff]  ;;  %v1398_v10 = vld [vmem:[%s1986_s14 + $0x50] sm:$0xff]  ;;  %v1400_v16 = vld [vmem:[%s1986_s14 + $0x58] sm:$0xff] }
 0x3aa   : >> { %1385 = vst [vmem:[%s1982_s15 + $0x18] sm:$0xff] %v1384_v4  ;;  %s1707_s29 = sshll.u32 %s3048_s22, 7  ;;  %v1402_v5 = vld [vmem:[%s1986_s14 + $0x60] sm:$0xff]  ;;  %v1404_v9 = vld [vmem:[%s1986_s14 + $0x68] sm:$0xff]  ;;  %v1406_v51 = vld [vmem:[%s1986_s14 + $0x70] sm:$0xff]  ;;  %s3036_s16 = smov %s3048_s22 }
 0x3ab   : >> { %1387 = vst [vmem:[%s1982_s15 + $0x20] sm:$0xff] %v1386_v3  ;;  %s1415_s8 = scalar_lea.vmem %s2727_s19, %s1707_s29 [#allocation2]   ;;  %s1416_s20 = scalar_lea.vmem %s2852_s0, %s1707_s29   ;;  %v1408_v44 = vld [vmem:[%s1986_s14 + $0x78] sm:$0xff] }
 0x3ac   : >> { %1389 = vst [vmem:[%s1982_s15 + $0x28] sm:$0xff] %v1388_v8  ;;  %s3035_s14 = smov %s1415_s8 }
 0x3ad   : >> { %1391 = vst [vmem:[%s1982_s15 + $0x30] sm:$0xff] %v1390_v24 }
 0x3ae   : >> { %1393 = vst [vmem:[%s1982_s15 + $0x38] sm:$0xff] %v1392_v61 }
 0x3af   : >> { %1395 = vst [vmem:[%s1982_s15 + $0x40] sm:$0xff] %v1394_v11 }
 0x3b0   : >> { %1397 = vst [vmem:[%s1982_s15 + $0x48] sm:$0xff] %v1396_v42 }
 0x3b1   : >> { %1399 = vst [vmem:[%s1982_s15 + $0x50] sm:$0xff] %v1398_v10 }
 0x3b2   : >> { %1401 = vst [vmem:[%s1982_s15 + $0x58] sm:$0xff] %v1400_v16  ;;  %1374 = sbr.rel (!%p1371_p2) target bundleno = 934 (0x3a6), region = 172 }
 0x3b3   : >> { %1403 = vst [vmem:[%s1982_s15 + $0x60] sm:$0xff] %v1402_v5 }
 0x3b4   : >> { %1405 = vst [vmem:[%s1982_s15 + $0x68] sm:$0xff] %v1404_v9 }
 0x3b5   : >> { %1407 = vst [vmem:[%s1982_s15 + $0x70] sm:$0xff] %v1406_v51 }
 0x3b6   : >> { %1409 = vst [vmem:[%s1982_s15 + $0x78] sm:$0xff] %v1408_v44  ;;  %s3034_s15 = smov %s1416_s20 }
 0x3b7 PF: > { %s2931_s29 = sand.u32 15, %s3046_s18   ;;  %s1719_s13 = sshll.u32 %s2858_s21, 7 }
 0x3b8   : > { %s1421_s9 = scalar_lea.vmem %s2727_s19, %s1719_s13 [#allocation2]   ;;  %s1423_s1 = scalar_lea.vmem %s2852_s0, %s1719_s13  }
 0x3b9   : > { %p1712_p3 = scmp.le.s32.totalorder %s2931_s29, 0 }
 0x3ba   : > { %s1996_s20 = smov (!%p1712_p3), %s1423_s1   ;;  %s2000_s8 = smov (!%p1712_p3), %s1421_s9  }
 0x3bb   : > { %1591 = sbr.rel (%p1712_p3) target bundleno = 968 (0x3c8), region = 177  ;;  %s2004_s2 = smov (!%p1712_p3), 0  }
 0x3bc   : > { %s2008_s22 = smov (!%p1712_p3), 0  }
 0x3c0 LB: >> { %v1433_v23 = vld [vmem:[%s2002_s8] sm:$0xff]  ;;  %s1435_s18 = sadd.s32 1, %s2006_s2  ;;  %s1427_s22 = sadd.s32 1, %s2010_s22   ;;  %s2010_s22 = sphi %s2008_s22, %s1427_s22   ;;  %s2006_s2 = sphi %s2004_s2, %s2005_s2   ;;  %s2002_s8 = sphi %s2000_s8, %s1440_s8   ;;  %s1998_s20 = sphi %s1996_s20, %s1441_s20  }
 0x3c1   : >> { %1434 = vst [vmem:[%s1998_s20] sm:$0xff] %v1433_v23  ;;  %p1436_p4 = scmp.ge.s32.totalorder %s1435_s18, %s2931_s29  ;;  %p1426_p7 = scmp.ge.s32.totalorder %s1427_s22, %s2931_s29 }
 0x3c3   : >> { %s3050_s18 = smov (%p1436_p4, %s1435_s18), 0  ;;  %1429 = sbr.rel (!%p1426_p7) target bundleno = 960 (0x3c0), region = 183 }
 0x3c4   : >> { %s1713_s0 = sshll.u32 %s3050_s18, 3  ;;  %s2005_s2 = smov %s3050_s18  }
 0x3c5   : >> { %s1440_s8 = scalar_lea.vmem %s1421_s9, %s1713_s0 [#allocation2]   ;;  %s1441_s20 = scalar_lea.vmem %s1423_s1, %s1713_s0  }
 0x3c8 PF: > { %s1450_s13 = scalar_lea.hbm %s2997_s5, %s2074_s28  ;;  %s3037_s21 = scalar_lea.vmem [#allocation3], %s2448_s23 }
 0x3c9   : > { %s1452_s15 = sshll.u32 %s3037_s21, 4  ;;  %s1454_s14 = sshll.u32 %s1450_s13, 4  ;;  %s1453_s15 = int_to_ptr.vmem [resolvable:$true] %s1452_s15  ;;  %s1455_s14 = int_to_ptr.hbm [resolvable:$true] %s1454_s14 }
 0x3ca   : > { %s1463_s20 = scalar_lea.hbm %s2998_s6, %s2074_s28  ;;  %s1866_s1 = sshra.s32 %s1455_s14, 4  ;;  %s1867_s1 = int_to_ptr.hbm [resolvable:$true] %s1866_s1 }
 0x3cb   : > { %s1868_s9 = scalar_lea.hbm %s1867_s1, 1  ;;  %s1872_s22 = scalar_lea.hbm %s2997_s5, 3 }
 0x3cc   : > { %p1869_p8 = scmp.ne.s32.totalorder %s1867_s1, %s1868_s9  ;;  %p1873_p11 = scmp.lt.s32.totalorder %s1867_s1, %s2997_s5 }
 0x3cd   : > { %p1874_p12 = scmp.lt.s32.totalorder %s1872_s22, %s1868_s9 }
 0x3ce   : > { %p1870_p9 = pnand %p1869_p8, %p2091_p5 }
 0x3cf   : > { %p1875_p13 = por %p1874_p12, %p1873_p11 }
 0x3d0   : > { %p1871_p10 = pneg %p1870_p9 }
 0x3d2   : > { %p1876_p0 = pnand %p1875_p13, %p1871_p10 }
 0x3d4   : > { %1879 = shalt.err (!%p1876_p0)
}
 0x3d5   : > { %s3038_s28 = scalar_lea.sflag [#allocation4], %s2448_s23  ;;  %s3039_s19 = scalar_lea.vmem [#allocation5], %s2448_s23 }
 0x3d6   : > { %1726 = dma.vmem_to_hbm [thread:$0]  (%p2091_p5), %s1453_s15, 16, %s1455_s14, %s3038_s28  }
 0x3d7   : > { %s1465_s2 = sshll.u32 %s3039_s19, 4  ;;  %s1467_s13 = sshll.u32 %s1463_s20, 4  ;;  %s1466_s2 = int_to_ptr.vmem [resolvable:$true] %s1465_s2  ;;  %s1468_s13 = int_to_ptr.hbm [resolvable:$true] %s1467_s13 }
 0x3d8   : > { %s1894_s21 = sshra.s32 %s1468_s13, 4  ;;  %s1900_s9 = scalar_lea.hbm %s2998_s6, 3  ;;  %s1895_s21 = int_to_ptr.hbm [resolvable:$true] %s1894_s21 }
 0x3d9   : > { %s1896_s16 = scalar_lea.hbm %s1895_s21, 1  ;;  %p1901_p4 = scmp.lt.s32.totalorder %s1895_s21, %s2998_s6 }
 0x3da   : > { %p1897_p1 = scmp.ne.s32.totalorder %s1895_s21, %s1896_s16  ;;  %p1902_p7 = scmp.lt.s32.totalorder %s1900_s9, %s1896_s16 }
 0x3dc   : > { %p1898_p2 = pnand %p1897_p1, %p2091_p5  ;;  %p1903_p8 = por %p1902_p7, %p1901_p4 }
 0x3de   : > { %p1899_p3 = pneg %p1898_p2 }
 0x3e0   : > { %p1904_p9 = pnand %p1903_p8, %p1899_p3 }
 0x3e2   : > { %1907 = shalt.err (!%p1904_p9)
}
 0x3e3   : > { %s3040_s15 = scalar_lea.sflag [#allocation6], %s2448_s23 }
 0x3e4   : > { %1727 = dma.vmem_to_hbm [thread:$0]  (%p2091_p5), %s1466_s2, 16, %s1468_s13, %s3040_s15  }
 0x3e5 PF: > { %p1737_p10 = scmp.ge.s32.totalorder %s1978_s27, 2  ;;  %s1489_s14 = sand.u32 1, %s1966_s24  }
 0x3e6   : > { %s1490_s20 = scalar_lea.sflag [#allocation4], %s1489_s14 }
 0x3e7   : > { %p1731_p11 = pnand %p1737_p10, %p2095_p6 }
 0x3e9   : > { %p1732_p12 = pneg %p1731_p11 }
 0x3eb   : > { %1957 = dma.done.wait (%p1732_p12), %s1490_s20, 16  }
 0x3ec   : > { %1959 = vsyncadd (%p1732_p12), %s1490_s20, 4294967280  ;;  %s1499_s22 = scalar_lea.sflag [#allocation6], %s1489_s14 }
 0x3ed   : > { %1961 = dma.done.wait (%p1732_p12), %s1499_s22, 16  }
 0x3ee   : > { %1963 = vsyncadd (%p1732_p12), %s1499_s22, 4294967280  ;;  %p21_p5 = scmp.ge.s32.totalorder %s2078_s30, 5   ;;  %s3041_s24 = smov %s1970_s25 }
 0x3ef   : > { %s3042_s25 = smov %s1974_s26  ;;  %s3043_s26 = smov %s2089_s10 }
 0x3f0   : > { %s3044_s27 = smov %s2078_s30  ;;  %23 = sbr.rel (!%p21_p5) target bundleno = 9 (0x9), region = 194 }
 0x3f5   :  { %1510 = vsyncpa [#allocation4], 1 }
 0x3f6   :  { %1512 = vsyncpa [#allocation4 + $0x1], 1 }
 0x3f7   :  { %1513 = vsyncpa [#allocation6], 1 }
 0x3f8   :  { %1515 = vsyncpa [#allocation6 + $0x1], 1 }

</bundles_post_ra>
